<compile_context>
chip_gen: v5e
topology: v5e:2x2
jax: 0.10.0
libtpu: 0.0.40
codegen_flags: <defaults>
</compile_context>

<pallas_src>
import jax
import jax.numpy as jnp
from jax.experimental import pallas as pl
from jax.experimental.pallas import tpu as pltpu

EPS = 1e-5


def _round_up(x, m):
    return (x + m - 1) // m * m


# ---------------------------------------------------------------------------
# Parameter folding helpers (inference-mode BatchNorm)
# ---------------------------------------------------------------------------
def _fold_bn(blk):
    scale = blk["gamma"] / jnp.sqrt(blk["var"] + EPS)
    bias = (blk["cb"] - blk["mean"]) * scale + blk["beta"]
    return scale, bias


def _fold_weight(w_oihw, scale, cin_pad, cout_pad):
    """(Cout,Cin,3,3) -> tap-major GEMM weight (9*cin_pad, cout_pad), BN scale folded, bf16."""
    cout, cin = w_oihw.shape[0], w_oihw.shape[1]
    w = jnp.transpose(w_oihw, (2, 3, 1, 0)) * scale[None, None, None, :]   # (3,3,Cin,Cout) f32
    w = jnp.pad(w, ((0, 0), (0, 0), (0, cin_pad - cin), (0, cout_pad - cout)))
    return w.reshape(9 * cin_pad, cout_pad).astype(jnp.bfloat16)


# ---------------------------------------------------------------------------
# Tile-row sizing (conservative so it also fits v7x's 64 MiB VMEM)
# ---------------------------------------------------------------------------
def _pick_tile_rows(Hp, Wp, Cin, C1p, C2p, budget=16 * 1024 * 1024):
    W4 = Wp + 4

    def vmem_bytes(th):
        fo = _round_up(th * W4, 8)
        fm = _round_up(fo + 2 * W4 + 2, 8)
        fi = _round_up(fm + 2 * W4 + 2, 8)
        dma = 2 * (fi * Cin * 2 + fm * 4 + fo * C2p * 4)            # double-buffered blocks
        wts = 2 * (9 * Cin * C1p + 9 * C1p * C2p) * 2 + 2 * (C1p + C2p) * 4
        scr = fm * C1p * 2 + fm * C1p * 4 + fo * C2p * 4            # mid scratch + f32 accumulators
        return dma + wts + scr

    th = max(1, min(Hp, 256))
    while th > 8 and vmem_bytes(th) > budget:
        th = max(8, th // 2)
    return th


# ---------------------------------------------------------------------------
# Fused DoubleConv (Conv3x3 -> BN -> ReLU -> Conv3x3 -> BN -> ReLU), NHWC in/out
# ---------------------------------------------------------------------------
def fused_double_conv(x, blk1, blk2):
    N, Hp, Wp, Cin = x.shape
    C1 = blk1["w"].shape[0]
    C2 = blk2["w"].shape[0]
    C1p = _round_up(C1, 128)                 # lane-dense intermediate channels
    C2p = _round_up(C2, 128)                 # lane-dense output channels
    W4 = Wp + 4                              # padded width (2-col halo each side)

    th = _pick_tile_rows(Hp, Wp, Cin, C1p, C2p)
    T = -(-Hp // th)                         # number of row tiles
    FLAT_OUT_P = _round_up(th * W4, 8)                      # flattened output rows / tile
    FLAT_MID_P = _round_up(FLAT_OUT_P + 2 * W4 + 2, 8)      # flattened mid rows (+ tap slack)
    FLAT_IN_P = _round_up(FLAT_MID_P + 2 * W4 + 2, 8)       # flattened input rows (+ tap slack)

    # ---- fold BN into weights (scale) and per-channel bias; pad channels ----
    s1, bias1 = _fold_bn(blk1)
    s2, bias2 = _fold_bn(blk2)
    w1 = _fold_weight(blk1["w"], s1, Cin, C1p)               # (9*Cin,  C1p) bf16
    w2 = _fold_weight(blk2["w"], s2, C1p, C2p)               # (9*C1p, C2p) bf16
    b1 = jnp.pad(bias1, (0, C1p - C1)).reshape(1, C1p).astype(jnp.float32)
    b2 = jnp.pad(bias2, (0, C2p - C2)).reshape(1, C2p).astype(jnp.float32)

    # ---- spatial zero pad (2-halo for the two chained pad=1 convs), bf16 ----
    pad_bottom = 2 + T * th - Hp
    xpad = jnp.pad(x, ((0, 0), (2, pad_bottom), (2, 2), (0, 0))).astype(jnp.bfloat16)

    # ---- overlapped row tiles, flattened so every 3x3 tap is a pure row shift ----
    tiles = []
    for t in range(T):
        xt = xpad[:, t * th:t * th + th + 4, :, :].reshape(N, (th + 4) * W4, Cin)
        tiles.append(jnp.pad(xt, ((0, 0), (0, FLAT_IN_P - (th + 4) * W4), (0, 0))))
    x_tiles = jnp.stack(tiles, axis=1).reshape(N, T * FLAT_IN_P, Cin)

    # ---- per-tile validity mask for the intermediate (zero = conv2's padding) ----
    q = jnp.arange(FLAT_MID_P)
    a = q // W4                          # mid row within tile
    b = q % W4                           # mid col (global col = b - 1)
    col_ok = (b >= 1) & (b <= Wp)
    in_mid = q < (th + 2) * W4
    row_g = jnp.arange(T)[:, None] * th + a[None, :] - 1
    mask = ((row_g >= 0) & (row_g < Hp) & col_ok[None, :] & in_mid[None, :])
    mask = mask.astype(jnp.float32)[:, :, None]              # (T, FLAT_MID_P, 1)

    def kernel(x_ref, mask_ref, w1_ref, b1_ref, w2_ref, b2_ref, o_ref, mid_ref):
        # conv1 (3x3, pad=1) + folded BN1 + ReLU, border masked -> bf16 VMEM scratch
        acc1 = jnp.zeros((FLAT_MID_P, C1p), jnp.float32)
        for k in range(9):
            dy, dx = divmod(k, 3)
            off = dy * W4 + dx
            xs = x_ref[0, off:off + FLAT_MID_P, :]
            acc1 = acc1 + jnp.dot(xs, w1_ref[k * Cin:(k + 1) * Cin, :],
                                  preferred_element_type=jnp.float32)
        mid = jnp.maximum(acc1 + b1_ref[...], 0.0) * mask_ref[0]
        mid_ref[...] = mid.astype(jnp.bfloat16)

        # conv2 (3x3, pad=1) + folded BN2 + ReLU -> output tile (lane-dense C2p)
        acc2 = jnp.zeros((FLAT_OUT_P, C2p), jnp.float32)
        for k in range(9):
            dy, dx = divmod(k, 3)
            off = dy * W4 + dx
            ms = mid_ref[off:off + FLAT_OUT_P, :]
            acc2 = acc2 + jnp.dot(ms, w2_ref[k * C1p:(k + 1) * C1p, :],
                                  preferred_element_type=jnp.float32)
        o_ref[0] = jnp.maximum(acc2 + b2_ref[...], 0.0).astype(o_ref.dtype)

    out = pl.pallas_call(
        kernel,
        out_shape=jax.ShapeDtypeStruct((N, T * FLAT_OUT_P, C2p), jnp.float32),
        grid_spec=pltpu.PrefetchScalarGridSpec(
            num_scalar_prefetch=0,
            grid=(N, T),
            in_specs=[
                pl.BlockSpec((1, FLAT_IN_P, Cin), lambda n, t: (n, t, 0)),
                pl.BlockSpec((1, FLAT_MID_P, 1), lambda n, t: (t, 0, 0)),
                pl.BlockSpec((9 * Cin, C1p), lambda n, t: (0, 0)),
                pl.BlockSpec((1, C1p), lambda n, t: (0, 0)),
                pl.BlockSpec((9 * C1p, C2p), lambda n, t: (0, 0)),
                pl.BlockSpec((1, C2p), lambda n, t: (0, 0)),
            ],
            out_specs=pl.BlockSpec((1, FLAT_OUT_P, C2p), lambda n, t: (n, t, 0)),
            scratch_shapes=[pltpu.VMEM((FLAT_MID_P, C1p), jnp.bfloat16)],
        ),
        compiler_params=pltpu.CompilerParams(
            dimension_semantics=("parallel", "parallel"),
            vmem_limit_bytes=48 * 1024 * 1024,
        ),
    )(x_tiles, mask, w1, b1, w2, b2)

    # un-flatten, drop halo columns / padded channels / padded rows
    out = out.reshape(N, T, FLAT_OUT_P, C2p)[:, :, :th * W4, :]
    out = out.reshape(N, T, th, W4, C2p)[:, :, :, :Wp, :C2]
    return out.reshape(N, T * th, Wp, C2)[:, :Hp]


# ---------------------------------------------------------------------------
# Down.forward : MaxPool2d(2) -> DoubleConv   (NCHW in / NCHW out)
# ---------------------------------------------------------------------------
def down_forward(x_nchw, params):
    x = jnp.transpose(x_nchw, (0, 2, 3, 1))                  # NCHW -> NHWC
    N, H, W, C = x.shape
    Hp, Wp = H // 2, W // 2
    x = x[:, :Hp * 2, :Wp * 2, :].reshape(N, Hp, 2, Wp, 2, C).max(axis=(2, 4))
    y = fused_double_conv(x, params["block1"], params["block2"])
    return jnp.transpose(y, (0, 3, 1, 2))                    # NHWC -> NCHW


# ---------------------------------------------------------------------------
# Deterministic parameter construction (mirrors nn.Conv2d / nn.BatchNorm2d)
# ---------------------------------------------------------------------------
def make_down_params(key, in_channels, out_channels):
    def conv_bn_params(k, cin, cout):
        kw, kb, kg, kbeta, km, kv = jax.random.split(k, 6)
        fan_in = 9 * cin
        w = jax.random.normal(kw, (cout, cin, 3, 3), jnp.float32) * (2.0 / fan_in) ** 0.5
        cb = 0.05 * jax.random.normal(kb, (cout,), jnp.float32)
        gamma = 1.0 + 0.1 * jax.random.normal(kg, (cout,), jnp.float32)
        beta = 0.1 * jax.random.normal(kbeta, (cout,), jnp.float32)
        mean = 0.1 * jax.random.normal(km, (cout,), jnp.float32)
        var = jax.random.uniform(kv, (cout,), jnp.float32, minval=0.5, maxval=1.5)
        return dict(w=w, cb=cb, gamma=gamma, beta=beta, mean=mean, var=var)

    k1, k2 = jax.random.split(key)
    return dict(block1=conv_bn_params(k1, in_channels, out_channels),
                block2=conv_bn_params(k2, out_channels, out_channels))


# ---------------------------------------------------------------------------
# Pure-JAX reference (same bf16/f32 numerics, via lax.conv) for correctness
# ---------------------------------------------------------------------------
def _ref_conv_block(x_nhwc, blk):
    scale, bias = _fold_bn(blk)
    w = (jnp.transpose(blk["w"], (2, 3, 1, 0)) * scale[None, None, None, :]).astype(jnp.bfloat16)
    y = jax.lax.conv_general_dilated(
        x_nhwc.astype(jnp.bfloat16), w, window_strides=(1, 1), padding="SAME",
        dimension_numbers=("NHWC", "HWIO", "NHWC"),
        preferred_element_type=jnp.float32)
    return jnp.maximum(y + bias[None, None, None, :], 0.0)


def down_ref(x_nchw, params):
    x = jnp.transpose(x_nchw, (0, 2, 3, 1))
    N, H, W, C = x.shape
    Hp, Wp = H // 2, W // 2
    x = x[:, :Hp * 2, :Wp * 2, :].reshape(N, Hp, 2, Wp, 2, C).max(axis=(2, 4))
    x = _ref_conv_block(x, params["block1"])
    x = _ref_conv_block(x, params["block2"])
    return jnp.transpose(x, (0, 3, 1, 2))


if __name__ == "__main__":
    N, C_IN, C_OUT, H, W = 2, 4, 8, 16, 16
    key = jax.random.PRNGKey(0)
    kx, kp = jax.random.split(key)
    x = jax.random.normal(kx, (N, C_IN, H, W), jnp.float32)     # NCHW like PyTorch
    params = make_down_params(kp, C_IN, C_OUT)

    out = jax.block_until_ready(jax.jit(down_forward)(x, params))
    assert out.shape == (N, C_OUT, H // 2, W // 2), out.shape

    ref = jax.block_until_ready(down_ref(x, params))
    max_err = float(jnp.max(jnp.abs(out - ref)))
    assert jnp.allclose(out, ref, rtol=1e-2, atol=1e-2), max_err

    print("KERNEL_OK")
</pallas_src>

<mosaic_0001>
module attributes {stable_mosaic.version = 11 : i64} {
  func.func @kernel(%arg0: i32, %arg1: i32, %arg2: memref<1x160x4xbf16, #tpu.memory_space<vmem>>, %arg3: memref<1x128x1xf32, #tpu.memory_space<vmem>>, %arg4: memref<36x128xbf16, #tpu.memory_space<vmem>>, %arg5: memref<1x128xf32, #tpu.memory_space<vmem>>, %arg6: memref<1152x128xbf16, #tpu.memory_space<vmem>>, %arg7: memref<1x128xf32, #tpu.memory_space<vmem>>, %arg8: memref<1x96x128xf32, #tpu.memory_space<vmem>>, %arg9: memref<128x128xbf16, #tpu.memory_space<vmem>>) attributes {dimension_semantics = [#tpu.dimension_semantics<parallel>, #tpu.dimension_semantics<parallel>], iteration_bounds = array<i64: 2, 1>, scalar_prefetch = 0 : i64, scratch_operands = 1 : i64, tpu.core_type = #tpu.core_type<tc>, window_params = [{transform_indices = @transform_0, window_bounds = array<i64: 1, 160, 4>}, {transform_indices = @transform_1, window_bounds = array<i64: 1, 128, 1>}, {pipeline_mode = #tpu.pipeline_mode<synchronous>, transform_indices = @transform_2, window_bounds = array<i64: 36, 128>}, {pipeline_mode = #tpu.pipeline_mode<synchronous>, transform_indices = @transform_3, window_bounds = array<i64: 1, 128>}, {pipeline_mode = #tpu.pipeline_mode<synchronous>, transform_indices = @transform_4, window_bounds = array<i64: 1152, 128>}, {pipeline_mode = #tpu.pipeline_mode<synchronous>, transform_indices = @transform_5, window_bounds = array<i64: 1, 128>}, {transform_indices = @transform_6, window_bounds = array<i64: 1, 96, 128>}]} {
    %cst = arith.constant 0.000000e+00 : f32
    %0 = vector.broadcast %cst : f32 to vector<128x128xf32>
    %c0 = arith.constant 0 : index
    %c0_0 = arith.constant 0 : index
    %c0_1 = arith.constant 0 : index
    %1 = vector.load %arg2[%c0, %c0_0, %c0_1] : memref<1x160x4xbf16, #tpu.memory_space<vmem>>, vector<1x128x4xbf16>
    %2 = vector.shape_cast %1 : vector<1x128x4xbf16> to vector<128x4xbf16>
    %c0_2 = arith.constant 0 : index
    %c0_3 = arith.constant 0 : index
    %3 = vector.load %arg4[%c0_2, %c0_3] : memref<36x128xbf16, #tpu.memory_space<vmem>>, vector<4x128xbf16>
    %cst_4 = arith.constant dense<0.000000e+00> : vector<128x128xf32>
    %4 = tpu.matmul %2, %3, %cst_4 {dimension_numbers = #tpu.dot_dimension_numbers<[1], [0], [0], [1], [0, 0, 1, 1], [], []>} : vector<128x4xbf16>, vector<4x128xbf16>, vector<128x128xf32> -> vector<128x128xf32>
    %5 = arith.addf %0, %4 : vector<128x128xf32>
    %c0_5 = arith.constant 0 : index
    %c1 = arith.constant 1 : index
    %c0_6 = arith.constant 0 : index
    %6 = vector.load %arg2[%c0_5, %c1, %c0_6] : memref<1x160x4xbf16, #tpu.memory_space<vmem>>, vector<1x128x4xbf16>
    %7 = vector.shape_cast %6 : vector<1x128x4xbf16> to vector<128x4xbf16>
    %c4 = arith.constant 4 : index
    %c0_7 = arith.constant 0 : index
    %8 = vector.load %arg4[%c4, %c0_7] : memref<36x128xbf16, #tpu.memory_space<vmem>>, vector<4x128xbf16>
    %cst_8 = arith.constant dense<0.000000e+00> : vector<128x128xf32>
    %9 = tpu.matmul %7, %8, %cst_8 {dimension_numbers = #tpu.dot_dimension_numbers<[1], [0], [0], [1], [0, 0, 1, 1], [], []>} : vector<128x4xbf16>, vector<4x128xbf16>, vector<128x128xf32> -> vector<128x128xf32>
    %10 = arith.addf %5, %9 : vector<128x128xf32>
    %c0_9 = arith.constant 0 : index
    %c2 = arith.constant 2 : index
    %c0_10 = arith.constant 0 : index
    %11 = vector.load %arg2[%c0_9, %c2, %c0_10] : memref<1x160x4xbf16, #tpu.memory_space<vmem>>, vector<1x128x4xbf16>
    %12 = vector.shape_cast %11 : vector<1x128x4xbf16> to vector<128x4xbf16>
    %c8 = arith.constant 8 : index
    %c0_11 = arith.constant 0 : index
    %13 = vector.load %arg4[%c8, %c0_11] : memref<36x128xbf16, #tpu.memory_space<vmem>>, vector<4x128xbf16>
    %cst_12 = arith.constant dense<0.000000e+00> : vector<128x128xf32>
    %14 = tpu.matmul %12, %13, %cst_12 {dimension_numbers = #tpu.dot_dimension_numbers<[1], [0], [0], [1], [0, 0, 1, 1], [], []>} : vector<128x4xbf16>, vector<4x128xbf16>, vector<128x128xf32> -> vector<128x128xf32>
    %15 = arith.addf %10, %14 : vector<128x128xf32>
    %c0_13 = arith.constant 0 : index
    %c12 = arith.constant 12 : index
    %c0_14 = arith.constant 0 : index
    %16 = vector.load %arg2[%c0_13, %c12, %c0_14] : memref<1x160x4xbf16, #tpu.memory_space<vmem>>, vector<1x128x4xbf16>
    %17 = vector.shape_cast %16 : vector<1x128x4xbf16> to vector<128x4xbf16>
    %c12_15 = arith.constant 12 : index
    %c0_16 = arith.constant 0 : index
    %18 = vector.load %arg4[%c12_15, %c0_16] : memref<36x128xbf16, #tpu.memory_space<vmem>>, vector<4x128xbf16>
    %cst_17 = arith.constant dense<0.000000e+00> : vector<128x128xf32>
    %19 = tpu.matmul %17, %18, %cst_17 {dimension_numbers = #tpu.dot_dimension_numbers<[1], [0], [0], [1], [0, 0, 1, 1], [], []>} : vector<128x4xbf16>, vector<4x128xbf16>, vector<128x128xf32> -> vector<128x128xf32>
    %20 = arith.addf %15, %19 : vector<128x128xf32>
    %c0_18 = arith.constant 0 : index
    %c13 = arith.constant 13 : index
    %c0_19 = arith.constant 0 : index
    %21 = vector.load %arg2[%c0_18, %c13, %c0_19] : memref<1x160x4xbf16, #tpu.memory_space<vmem>>, vector<1x128x4xbf16>
    %22 = vector.shape_cast %21 : vector<1x128x4xbf16> to vector<128x4xbf16>
    %c16 = arith.constant 16 : index
    %c0_20 = arith.constant 0 : index
    %23 = vector.load %arg4[%c16, %c0_20] : memref<36x128xbf16, #tpu.memory_space<vmem>>, vector<4x128xbf16>
    %cst_21 = arith.constant dense<0.000000e+00> : vector<128x128xf32>
    %24 = tpu.matmul %22, %23, %cst_21 {dimension_numbers = #tpu.dot_dimension_numbers<[1], [0], [0], [1], [0, 0, 1, 1], [], []>} : vector<128x4xbf16>, vector<4x128xbf16>, vector<128x128xf32> -> vector<128x128xf32>
    %25 = arith.addf %20, %24 : vector<128x128xf32>
    %c0_22 = arith.constant 0 : index
    %c14 = arith.constant 14 : index
    %c0_23 = arith.constant 0 : index
    %26 = vector.load %arg2[%c0_22, %c14, %c0_23] : memref<1x160x4xbf16, #tpu.memory_space<vmem>>, vector<1x128x4xbf16>
    %27 = vector.shape_cast %26 : vector<1x128x4xbf16> to vector<128x4xbf16>
    %c20 = arith.constant 20 : index
    %c0_24 = arith.constant 0 : index
    %28 = vector.load %arg4[%c20, %c0_24] : memref<36x128xbf16, #tpu.memory_space<vmem>>, vector<4x128xbf16>
    %cst_25 = arith.constant dense<0.000000e+00> : vector<128x128xf32>
    %29 = tpu.matmul %27, %28, %cst_25 {dimension_numbers = #tpu.dot_dimension_numbers<[1], [0], [0], [1], [0, 0, 1, 1], [], []>} : vector<128x4xbf16>, vector<4x128xbf16>, vector<128x128xf32> -> vector<128x128xf32>
    %30 = arith.addf %25, %29 : vector<128x128xf32>
    %c0_26 = arith.constant 0 : index
    %c24 = arith.constant 24 : index
    %c0_27 = arith.constant 0 : index
    %31 = vector.load %arg2[%c0_26, %c24, %c0_27] : memref<1x160x4xbf16, #tpu.memory_space<vmem>>, vector<1x128x4xbf16>
    %32 = vector.shape_cast %31 : vector<1x128x4xbf16> to vector<128x4xbf16>
    %c24_28 = arith.constant 24 : index
    %c0_29 = arith.constant 0 : index
    %33 = vector.load %arg4[%c24_28, %c0_29] : memref<36x128xbf16, #tpu.memory_space<vmem>>, vector<4x128xbf16>
    %cst_30 = arith.constant dense<0.000000e+00> : vector<128x128xf32>
    %34 = tpu.matmul %32, %33, %cst_30 {dimension_numbers = #tpu.dot_dimension_numbers<[1], [0], [0], [1], [0, 0, 1, 1], [], []>} : vector<128x4xbf16>, vector<4x128xbf16>, vector<128x128xf32> -> vector<128x128xf32>
    %35 = arith.addf %30, %34 : vector<128x128xf32>
    %c0_31 = arith.constant 0 : index
    %c25 = arith.constant 25 : index
    %c0_32 = arith.constant 0 : index
    %36 = vector.load %arg2[%c0_31, %c25, %c0_32] : memref<1x160x4xbf16, #tpu.memory_space<vmem>>, vector<1x128x4xbf16>
    %37 = vector.shape_cast %36 : vector<1x128x4xbf16> to vector<128x4xbf16>
    %c28 = arith.constant 28 : index
    %c0_33 = arith.constant 0 : index
    %38 = vector.load %arg4[%c28, %c0_33] : memref<36x128xbf16, #tpu.memory_space<vmem>>, vector<4x128xbf16>
    %cst_34 = arith.constant dense<0.000000e+00> : vector<128x128xf32>
    %39 = tpu.matmul %37, %38, %cst_34 {dimension_numbers = #tpu.dot_dimension_numbers<[1], [0], [0], [1], [0, 0, 1, 1], [], []>} : vector<128x4xbf16>, vector<4x128xbf16>, vector<128x128xf32> -> vector<128x128xf32>
    %40 = arith.addf %35, %39 : vector<128x128xf32>
    %c0_35 = arith.constant 0 : index
    %c26 = arith.constant 26 : index
    %c0_36 = arith.constant 0 : index
    %41 = vector.load %arg2[%c0_35, %c26, %c0_36] : memref<1x160x4xbf16, #tpu.memory_space<vmem>>, vector<1x128x4xbf16>
    %42 = vector.shape_cast %41 : vector<1x128x4xbf16> to vector<128x4xbf16>
    %c32 = arith.constant 32 : index
    %c0_37 = arith.constant 0 : index
    %43 = vector.load %arg4[%c32, %c0_37] : memref<36x128xbf16, #tpu.memory_space<vmem>>, vector<4x128xbf16>
    %cst_38 = arith.constant dense<0.000000e+00> : vector<128x128xf32>
    %44 = tpu.matmul %42, %43, %cst_38 {dimension_numbers = #tpu.dot_dimension_numbers<[1], [0], [0], [1], [0, 0, 1, 1], [], []>} : vector<128x4xbf16>, vector<4x128xbf16>, vector<128x128xf32> -> vector<128x128xf32>
    %45 = arith.addf %40, %44 : vector<128x128xf32>
    %c0_39 = arith.constant 0 : index
    %c0_40 = arith.constant 0 : index
    %46 = vector.load %arg5[%c0_39, %c0_40] : memref<1x128xf32, #tpu.memory_space<vmem>>, vector<1x128xf32>
    %47 = vector.broadcast %46 : vector<1x128xf32> to vector<128x128xf32>
    %48 = arith.addf %45, %47 : vector<128x128xf32>
    %cst_41 = arith.constant 0.000000e+00 : f32
    %49 = vector.broadcast %cst_41 : f32 to vector<128x128xf32>
    %50 = arith.maximumf %48, %49 : vector<128x128xf32>
    %c0_42 = arith.constant 0 : index
    %c0_43 = arith.constant 0 : index
    %c0_44 = arith.constant 0 : index
    %51 = vector.load %arg3[%c0_42, %c0_43, %c0_44] : memref<1x128x1xf32, #tpu.memory_space<vmem>>, vector<1x128x1xf32>
    %52 = vector.shape_cast %51 : vector<1x128x1xf32> to vector<128x1xf32>
    %53 = vector.broadcast %52 : vector<128x1xf32> to vector<128x128xf32>
    %54 = arith.mulf %50, %53 : vector<128x128xf32>
    %55 = arith.truncf %54 : vector<128x128xf32> to vector<128x128xbf16>
    %c0_45 = arith.constant 0 : index
    %c0_46 = arith.constant 0 : index
    %56 = vector.load %arg9[%c0_45, %c0_46] : memref<128x128xbf16, #tpu.memory_space<vmem>>, vector<128x128xbf16>
    tpu.vector_store %arg9[%c0_45, %c0_46], %55 {strides = array<i32>} : memref<128x128xbf16, #tpu.memory_space<vmem>>, vector<128x128xbf16>,
    %cst_47 = arith.constant 0.000000e+00 : f32
    %57 = vector.broadcast %cst_47 : f32 to vector<96x128xf32>
    %c0_48 = arith.constant 0 : index
    %c0_49 = arith.constant 0 : index
    %58 = vector.load %arg9[%c0_48, %c0_49] : memref<128x128xbf16, #tpu.memory_space<vmem>>, vector<96x128xbf16>
    %c0_50 = arith.constant 0 : index
    %c0_51 = arith.constant 0 : index
    %59 = vector.load %arg6[%c0_50, %c0_51] : memref<1152x128xbf16, #tpu.memory_space<vmem>>, vector<128x128xbf16>
    %cst_52 = arith.constant dense<0.000000e+00> : vector<96x128xf32>
    %60 = tpu.matmul %58, %59, %cst_52 {dimension_numbers = #tpu.dot_dimension_numbers<[1], [0], [0], [1], [0, 0, 1, 1], [], []>} : vector<96x128xbf16>, vector<128x128xbf16>, vector<96x128xf32> -> vector<96x128xf32>
    %61 = arith.addf %57, %60 : vector<96x128xf32>
    %c1_53 = arith.constant 1 : index
    %c0_54 = arith.constant 0 : index
    %62 = vector.load %arg9[%c1_53, %c0_54] : memref<128x128xbf16, #tpu.memory_space<vmem>>, vector<96x128xbf16>
    %c128 = arith.constant 128 : index
    %c0_55 = arith.constant 0 : index
    %63 = vector.load %arg6[%c128, %c0_55] : memref<1152x128xbf16, #tpu.memory_space<vmem>>, vector<128x128xbf16>
    %cst_56 = arith.constant dense<0.000000e+00> : vector<96x128xf32>
    %64 = tpu.matmul %62, %63, %cst_56 {dimension_numbers = #tpu.dot_dimension_numbers<[1], [0], [0], [1], [0, 0, 1, 1], [], []>} : vector<96x128xbf16>, vector<128x128xbf16>, vector<96x128xf32> -> vector<96x128xf32>
    %65 = arith.addf %61, %64 : vector<96x128xf32>
    %c2_57 = arith.constant 2 : index
    %c0_58 = arith.constant 0 : index
    %66 = vector.load %arg9[%c2_57, %c0_58] : memref<128x128xbf16, #tpu.memory_space<vmem>>, vector<96x128xbf16>
    %c256 = arith.constant 256 : index
    %c0_59 = arith.constant 0 : index
    %67 = vector.load %arg6[%c256, %c0_59] : memref<1152x128xbf16, #tpu.memory_space<vmem>>, vector<128x128xbf16>
    %cst_60 = arith.constant dense<0.000000e+00> : vector<96x128xf32>
    %68 = tpu.matmul %66, %67, %cst_60 {dimension_numbers = #tpu.dot_dimension_numbers<[1], [0], [0], [1], [0, 0, 1, 1], [], []>} : vector<96x128xbf16>, vector<128x128xbf16>, vector<96x128xf32> -> vector<96x128xf32>
    %69 = arith.addf %65, %68 : vector<96x128xf32>
    %c12_61 = arith.constant 12 : index
    %c0_62 = arith.constant 0 : index
    %70 = vector.load %arg9[%c12_61, %c0_62] : memref<128x128xbf16, #tpu.memory_space<vmem>>, vector<96x128xbf16>
    %c384 = arith.constant 384 : index
    %c0_63 = arith.constant 0 : index
    %71 = vector.load %arg6[%c384, %c0_63] : memref<1152x128xbf16, #tpu.memory_space<vmem>>, vector<128x128xbf16>
    %cst_64 = arith.constant dense<0.000000e+00> : vector<96x128xf32>
    %72 = tpu.matmul %70, %71, %cst_64 {dimension_numbers = #tpu.dot_dimension_numbers<[1], [0], [0], [1], [0, 0, 1, 1], [], []>} : vector<96x128xbf16>, vector<128x128xbf16>, vector<96x128xf32> -> vector<96x128xf32>
    %73 = arith.addf %69, %72 : vector<96x128xf32>
    %c13_65 = arith.constant 13 : index
    %c0_66 = arith.constant 0 : index
    %74 = vector.load %arg9[%c13_65, %c0_66] : memref<128x128xbf16, #tpu.memory_space<vmem>>, vector<96x128xbf16>
    %c512 = arith.constant 512 : index
    %c0_67 = arith.constant 0 : index
    %75 = vector.load %arg6[%c512, %c0_67] : memref<1152x128xbf16, #tpu.memory_space<vmem>>, vector<128x128xbf16>
    %cst_68 = arith.constant dense<0.000000e+00> : vector<96x128xf32>
    %76 = tpu.matmul %74, %75, %cst_68 {dimension_numbers = #tpu.dot_dimension_numbers<[1], [0], [0], [1], [0, 0, 1, 1], [], []>} : vector<96x128xbf16>, vector<128x128xbf16>, vector<96x128xf32> -> vector<96x128xf32>
    %77 = arith.addf %73, %76 : vector<96x128xf32>
    %c14_69 = arith.constant 14 : index
    %c0_70 = arith.constant 0 : index
    %78 = vector.load %arg9[%c14_69, %c0_70] : memref<128x128xbf16, #tpu.memory_space<vmem>>, vector<96x128xbf16>
    %c640 = arith.constant 640 : index
    %c0_71 = arith.constant 0 : index
    %79 = vector.load %arg6[%c640, %c0_71] : memref<1152x128xbf16, #tpu.memory_space<vmem>>, vector<128x128xbf16>
    %cst_72 = arith.constant dense<0.000000e+00> : vector<96x128xf32>
    %80 = tpu.matmul %78, %79, %cst_72 {dimension_numbers = #tpu.dot_dimension_numbers<[1], [0], [0], [1], [0, 0, 1, 1], [], []>} : vector<96x128xbf16>, vector<128x128xbf16>, vector<96x128xf32> -> vector<96x128xf32>
    %81 = arith.addf %77, %80 : vector<96x128xf32>
    %c24_73 = arith.constant 24 : index
    %c0_74 = arith.constant 0 : index
    %82 = vector.load %arg9[%c24_73, %c0_74] : memref<128x128xbf16, #tpu.memory_space<vmem>>, vector<96x128xbf16>
    %c768 = arith.constant 768 : index
    %c0_75 = arith.constant 0 : index
    %83 = vector.load %arg6[%c768, %c0_75] : memref<1152x128xbf16, #tpu.memory_space<vmem>>, vector<128x128xbf16>
    %cst_76 = arith.constant dense<0.000000e+00> : vector<96x128xf32>
    %84 = tpu.matmul %82, %83, %cst_76 {dimension_numbers = #tpu.dot_dimension_numbers<[1], [0], [0], [1], [0, 0, 1, 1], [], []>} : vector<96x128xbf16>, vector<128x128xbf16>, vector<96x128xf32> -> vector<96x128xf32>
    %85 = arith.addf %81, %84 : vector<96x128xf32>
    %c25_77 = arith.constant 25 : index
    %c0_78 = arith.constant 0 : index
    %86 = vector.load %arg9[%c25_77, %c0_78] : memref<128x128xbf16, #tpu.memory_space<vmem>>, vector<96x128xbf16>
    %c896 = arith.constant 896 : index
    %c0_79 = arith.constant 0 : index
    %87 = vector.load %arg6[%c896, %c0_79] : memref<1152x128xbf16, #tpu.memory_space<vmem>>, vector<128x128xbf16>
    %cst_80 = arith.constant dense<0.000000e+00> : vector<96x128xf32>
    %88 = tpu.matmul %86, %87, %cst_80 {dimension_numbers = #tpu.dot_dimension_numbers<[1], [0], [0], [1], [0, 0, 1, 1], [], []>} : vector<96x128xbf16>, vector<128x128xbf16>, vector<96x128xf32> -> vector<96x128xf32>
    %89 = arith.addf %85, %88 : vector<96x128xf32>
    %c26_81 = arith.constant 26 : index
    %c0_82 = arith.constant 0 : index
    %90 = vector.load %arg9[%c26_81, %c0_82] : memref<128x128xbf16, #tpu.memory_space<vmem>>, vector<96x128xbf16>
    %c1024 = arith.constant 1024 : index
    %c0_83 = arith.constant 0 : index
    %91 = vector.load %arg6[%c1024, %c0_83] : memref<1152x128xbf16, #tpu.memory_space<vmem>>, vector<128x128xbf16>
    %cst_84 = arith.constant dense<0.000000e+00> : vector<96x128xf32>
    %92 = tpu.matmul %90, %91, %cst_84 {dimension_numbers = #tpu.dot_dimension_numbers<[1], [0], [0], [1], [0, 0, 1, 1], [], []>} : vector<96x128xbf16>, vector<128x128xbf16>, vector<96x128xf32> -> vector<96x128xf32>
    %93 = arith.addf %89, %92 : vector<96x128xf32>
    %c0_85 = arith.constant 0 : index
    %c0_86 = arith.constant 0 : index
    %94 = vector.load %arg7[%c0_85, %c0_86] : memref<1x128xf32, #tpu.memory_space<vmem>>, vector<1x128xf32>
    %95 = vector.broadcast %94 : vector<1x128xf32> to vector<96x128xf32>
    %96 = arith.addf %93, %95 : vector<96x128xf32>
    %cst_87 = arith.constant 0.000000e+00 : f32
    %97 = vector.broadcast %cst_87 : f32 to vector<96x128xf32>
    %98 = arith.maximumf %96, %97 : vector<96x128xf32>
    %c0_88 = arith.constant 0 : index
    %c0_89 = arith.constant 0 : index
    %c0_90 = arith.constant 0 : index
    %99 = vector.load %arg8[%c0_88, %c0_89, %c0_90] : memref<1x96x128xf32, #tpu.memory_space<vmem>>, vector<1x96x128xf32>
    %100 = vector.shape_cast %99 : vector<1x96x128xf32> to vector<96x128xf32>
    %101 = vector.shape_cast %98 : vector<96x128xf32> to vector<1x96x128xf32>
    tpu.vector_store %arg8[%c0_88, %c0_89, %c0_90], %101 {strides = array<i32>} : memref<1x96x128xf32, #tpu.memory_space<vmem>>, vector<1x96x128xf32>,
    return
  }
  func.func @transform_0(%arg0: i32, %arg1: i32) -> (i32, i32, i32) {
    %c0_i32 = arith.constant 0 : i32
    %c0_i32_0 = arith.constant 0 : i32
    return %arg0, %arg1, %c0_i32 : i32, i32, i32
  }
  func.func @transform_1(%arg0: i32, %arg1: i32) -> (i32, i32, i32) {
    %c0_i32 = arith.constant 0 : i32
    %c0_i32_0 = arith.constant 0 : i32
    %c0_i32_1 = arith.constant 0 : i32
    return %arg1, %c0_i32, %c0_i32_0 : i32, i32, i32
  }
  func.func @transform_2(%arg0: i32, %arg1: i32) -> (i32, i32) {
    %c0_i32 = arith.constant 0 : i32
    %c0_i32_0 = arith.constant 0 : i32
    %c0_i32_1 = arith.constant 0 : i32
    return %c0_i32, %c0_i32_0 : i32, i32
  }
  func.func @transform_3(%arg0: i32, %arg1: i32) -> (i32, i32) {
    %c0_i32 = arith.constant 0 : i32
    %c0_i32_0 = arith.constant 0 : i32
    %c0_i32_1 = arith.constant 0 : i32
    return %c0_i32, %c0_i32_0 : i32, i32
  }
  func.func @transform_4(%arg0: i32, %arg1: i32) -> (i32, i32) {
    %c0_i32 = arith.constant 0 : i32
    %c0_i32_0 = arith.constant 0 : i32
    %c0_i32_1 = arith.constant 0 : i32
    return %c0_i32, %c0_i32_0 : i32, i32
  }
  func.func @transform_5(%arg0: i32, %arg1: i32) -> (i32, i32) {
    %c0_i32 = arith.constant 0 : i32
    %c0_i32_0 = arith.constant 0 : i32
    %c0_i32_1 = arith.constant 0 : i32
    return %c0_i32, %c0_i32_0 : i32, i32
  }
  func.func @transform_6(%arg0: i32, %arg1: i32) -> (i32, i32, i32) {
    %c0_i32 = arith.constant 0 : i32
    %c0_i32_0 = arith.constant 0 : i32
    return %arg0, %arg1, %c0_i32 : i32, i32, i32
  }
}

</mosaic_0001>

<bundles_post_ra>
// kernel: down_forward.1
= control target key start
LH: loop header
LB: loop body
LE: loop exit
PB: predicated region body
PF: predicated region fallthrough
CT: control target
= control target key end

     0   :  { %s4317_s21 = smov 0   ;;  %s4319_s22 = smov 0   ;;  %s5421_s0 = inlined_call_operand.vmem [shape: bf16[2,160,4], index: 0, kind: input, shape index: {}]   ;;  %s5422_s1 = inlined_call_operand.vmem [shape: f32[1,128,1], index: 1, kind: input, shape index: {}]   ;;  %s5423_s2 = inlined_call_operand.vmem [shape: bf16[36,128], index: 2, kind: input, shape index: {}]   ;;  %s5424_s3 = inlined_call_operand.vmem [shape: f32[1,128], index: 3, kind: input, shape index: {}]   ;;  %s5425_s4 = inlined_call_operand.vmem [shape: bf16[1152,128], index: 4, kind: input, shape index: {}]   ;;  %s5426_s5 = inlined_call_operand.vmem [shape: f32[1,128], index: 5, kind: input, shape index: {}]   ;;  %s5427_s6 = inlined_call_operand.vmem [shape: f32[2,96,128], index: 6, kind: output, shape index: {}]  }
   0x1   :  { %s4321_s23 = smov 0  }
   0x2 LB: > { %s28_s24 = sadd.s32 1, %s4275_s22  ;;  %p3474_p0 = scmp.ge.s32.totalorder %s4279_s23, 1  ;;  %s4279_s23 = sphi %s4321_s23, %s16_s23   ;;  %s4275_s22 = sphi %s4319_s22, %s5429_s22   ;;  %s4271_s21 = sphi %s4317_s21, %s5428_s21  }
   0x3   : > { %p30_p1 = scmp.ge.s32.totalorder %s28_s24, 2  ;;  %p243_p2 = scmp.lt.s32.totalorder %s4279_s23, 3 }
   0x5   : > { %s5431_s24 = smov (%p30_p1, %s28_s24), 0  ;;  %p244_p3 = pnand %p3474_p0, %p243_p2 }
   0x6   : > { %p287_p4 = scmp.lt.s32.totalorder (!%p244_p3), %s4271_s21, 1 }
   0x7   : > { %247 = sbr.rel (%p244_p3) target bundleno = 890 (0x37a), region = 44 }
   0xc   : > { %v328_v0 = vld [vmem:[%s5423_s2] sm:$0x3]  ;;  %vm472_vm0 = vcmask 1041408   ;;  %v330_v2 = vld [vmem:[%s5423_s2] sm:$0xc]  ;;  %s5433_s21 = smov (!%p287_p4, %s4271_s21), 1 }
   0xd   : > { %v542_v1 = vsel %vm472_vm0, %v328_v0, 0  ;;  %v444_v3 = vunpack.c.l.b16 %v330_v2  ;;  %v594_v4 = vld [vmem:[%s5423_s2 + $0x4] sm:$0x3]  ;;  %s4225_s7 = smul.u32 80, %s5433_s21  ;;  %vm447_vm1 = vcmask 31744   ;;  %vm598_vm2 = vcmask 1046528  }
   0xe   : > { %4222 = vmatpush.bf16.msra.mxu3 %v542_v1  ;;  %551 = vmatpush.bf16.msra.mxu1 %v542_v1  ;;  %v641_v5 = vsel %vm472_vm0, %v594_v4, 0  ;;  %vm374_vm3 = vsmask.f32 7424  ;;  %v725_v23 = vld [vmem:[%s5423_s2 + $0x4] sm:$0xc]  ;;  %vm769_vm4 = vcmask 1045504  }
   0xf   : > { %v445_v6 = vpack.c.b16 %v444_v3, %v444_v3  ;;  %4223 = vmatpush.bf16.msra.mxu2 %v641_v5  ;;  %s4352_s10 = scalar_lea.vmem %s5421_s0, %s4225_s7  ;;  %v788_v24 = vunpack.c.l.b16 %v725_v23  ;;  %vm1066_vm5 = vcmask 1044480   ;;  %vm888_vm6 = vsmask.f32 5376  ;;  %s4226_s27 = smul.u32 96, %s5433_s21 }
  0x10   : > { %v4355_v8 = vld [vmem:[%s4352_s10 + $0x30] sm:$0xff]  ;;  %v4162_v9 = vld [vmem:[%s4352_s10] sm:$0xff]   ;;  %v4359_v10 = vld [vmem:[%s4352_s10 + $0x8] sm:$0xff] }
  0x11   : > { %v446_v7 = vrot.slane %v445_v6, 2  ;;  %v376_v12 = vshrl.u32 %v4162_v9, 16  ;;  %v378_v13 = vshll.u32 %v4162_v9, 16  ;;  %3513 = vmatmul.msk.bf16.vlgmr.msra.gmra.mxu1 %vm447_vm1, %v4162_v9  ;;  %v4040_v14 = vld [vmem:[%s4352_s10 + $0x10] sm:$0xff]  ;;  %3519 = vmatmul.msk.bf16.vlgmr.msra.gmra.mxu3 %vm447_vm1, %v4355_v8  ;;  %v383_v15 = vshll.u32 %v4359_v10, 16  ;;  %v4041_v26 = vld [vmem:[%s4352_s10 + $0x18] sm:$0xff]  ;;  %s5377_s30 = scalar_lea.vmem %s5427_s6, %s4226_s27 }
  0x12   : > { %4224 = vmatpush.bf16.msrb.mxu3 %v641_v5  ;;  %v600_v16 = vrot.slane %v4359_v10, 1  ;;  %v602_v18 = vrot.slane %v4040_v14, 1  ;;  %v789_v25 = vpack.c.b16 %v788_v24, %v788_v24  ;;  %v387_v28 = vshrl.u32 %v4359_v10, 16  ;;  %v4380_v30 = vld [vmem:[%s4352_s10 + $0x38] sm:$0xff]  ;;  %v329_v33 = vld [vmem:[%s4352_s10 + $0x40] sm:$0x1] }
  0x13   : > { %v474_v11 = vsel %vm472_vm0, %v446_v7, 0  ;;  %v380_v17 = vrot.slane %v378_v13, 1  ;;  %v385_v19 = vrot.slane %v383_v15, 1  ;;  %v391_v29 = vshll.u32 %v4040_v14, 16  ;;  %v4042_v42 = vld [vmem:[%s4352_s10 + $0x20] sm:$0xff]  ;;  %v4400_v48 = vld [vmem:[%s4352_s10 + $0x8] sm:$0xff]  }
  0x14   : > { %483 = vmatpush.bf16.msra.mxu0 %v474_v11  ;;  %v603_v21 = vsel %vm598_vm2, %v600_v16, %v602_v18  ;;  %v790_v27 = vrot.slane %v789_v25, 2  ;;  %v604_v32 = vrot.slane %v4041_v26, 1  ;;  %v364_v36 = vunpack.c.l.b16 %v329_v33  ;;  %v708_v47 = vld [vmem:[%s4352_s10 + $0x4] sm:$0xc]  ;;  %v4409_v55 = vld [vmem:[%s4352_s10 + $0xc] sm:$0xff]  ;;  %v4426_v4 = vld [vmem:[%s4352_s10 + $0x14] sm:$0xff] }
  0x15   : > { %v381_v20 = vor.u32 %v380_v17, %v376_v12  ;;  %3522 = vmatmul.msk.bf16.vlgmr.msra.gmra.mxu2 %vm447_vm1, %v603_v21  ;;  %v389_v34 = vor.u32 %v387_v28, %v385_v19  ;;  %v393_v35 = vrot.slane %v391_v29, 1  ;;  %v612_v40 = vrot.slane %v4380_v30, 1  ;;  %v4043_v59 = vld [vmem:[%s4352_s10 + $0x28] sm:$0xff]  ;;  %v4438_v17 = vld [vmem:[%s4352_s10 + $0x1c] sm:$0xff] }
  0x16   : > { %v816_v31 = vsel %vm472_vm0, %v790_v27, 0  ;;  %v605_v37 = vsel %vm598_vm2, %v602_v18, %v604_v32  ;;  %v4391_v39 = vpack.c.b16 %v364_v36, %v364_v36  ;;  %v395_v43 = vshrl.u32 %v4040_v14, 16  ;;  %v884_v36 = vld [vmem:[%s5423_s2 + $0x8] sm:$0x3] }
  0x17   : > { %v386_v22 = vsel %vm374_vm3, %v381_v20, %v385_v19  ;;  %825 = vmatpush.bf16.msra.mxu3 %v816_v31  ;;  %v394_v38 = vsel %vm374_vm3, %v389_v34, %v393_v35  ;;  %v399_v44 = vshll.u32 %v4041_v26, 16  ;;  %v606_v46 = vrot.slane %v4042_v42, 1 }
  0x18   : > { %650 = vmatpush.bf16.msrb.mxu0 %v641_v5  ;;  %v614_v41 = vrot.slane %v4391_v39, 1  ;;  %v397_v49 = vor.u32 %v395_v43, %v393_v35  ;;  %v743_v51 = vunpack.c.l.b16 %v708_v47  ;;  %v744_v52 = vunpack.c.l.b16 %v4400_v48  ;;  %v4460_v35 = vld [vmem:[%s4352_s10 + $0x2c] sm:$0xff] }
  0x19   : > { %3505 = vmatmul.msk.bf16.vlgmr.msra.gmra.mxu0 %vm447_vm1, %v386_v22  ;;  %v401_v50 = vrot.slane %v399_v44, 1  ;;  %v607_v53 = vsel %vm598_vm2, %v604_v32, %v606_v46  ;;  %v771_v58 = vrot.slane %v4409_v55, 2  ;;  %v403_v60 = vshrl.u32 %v4041_v26, 16  ;;  %v1062_v44 = vld [vmem:[%s5423_s2 + $0x8] sm:$0xc] }
  0x1a   : > { %v615_v45 = vsel %vm598_vm2, %v612_v40, %v614_v41  ;;  %v4413_v56 = vpack.c.b16 %v744_v52, %v743_v51  ;;  %v407_v61 = vshll.u32 %v4042_v42, 16  ;;  %v608_v63 = vrot.slane %v4043_v59, 1  ;;  %v1346_v41 = vld [vmem:[%s5423_s2 + $0xc] sm:$0xc]  ;;  %v1061_v51 = vld [vmem:[%s4352_s10 + $0x4] sm:$0x8] }
  0x1b   : > { %v402_v54 = vsel %vm374_vm3, %v397_v49, %v401_v50  ;;  %v405_v0 = vor.u32 %v403_v60, %v401_v50  ;;  %v773_v5 = vrot.slane %v4426_v4, 2  ;;  %v411_v6 = vshrl.u32 %v4042_v42, 16 }
  0x1c   : > { %v770_v57 = vrot.slane %v4413_v56, 2  ;;  %v409_v1 = vrot.slane %v407_v61, 1  ;;  %v609_v2 = vsel %vm598_vm2, %v606_v46, %v608_v63  ;;  %v415_v7 = vshll.u32 %v4043_v59, 16 }
  0x1d   : > { %v774_v9 = vsel %vm769_vm4, %v771_v58, %v773_v5  ;;  %v610_v11 = vrot.slane %v4355_v8, 1  ;;  %v775_v18 = vrot.slane %v4438_v17, 2  ;;  %v419_v19 = vshrl.u32 %v4043_v59, 16 }
  0x1e   : > { %v772_v62 = vsel %vm769_vm4, %v770_v57, %v771_v58  ;;  %v410_v3 = vsel %vm374_vm3, %v405_v0, %v409_v1  ;;  %v413_v12 = vor.u32 %v411_v6, %v409_v1  ;;  %v417_v13 = vrot.slane %v415_v7, 1  ;;  %v4053_v57 = vld [vmem:[%s4352_s10 + $0xc] sm:$0xff] }
  0x1f   : > { %v423_v20 = vshll.u32 %v4355_v8, 16  ;;  %v776_v21 = vsel %vm769_vm4, %v773_v5, %v775_v18  ;;  %v613_v24 = vsel %vm598_vm2, %v610_v11, %v612_v40  ;;  %v427_v28 = vshrl.u32 %v4355_v8, 16  ;;  %v4210_v5 = vld [vmem:[%s4352_s10] sm:$0xe] }
  0x20   : > { %v418_v15 = vsel %vm374_vm3, %v413_v12, %v417_v13  ;;  %v421_v22 = vor.u32 %v419_v19, %v417_v13  ;;  %v431_v29 = vshll.u32 %v4380_v30, 16  ;;  %v994_v8 = vsel %vm472_vm0, %v884_v36, 0  ;;  %v1555_v12 = vld [vmem:[%s5423_s2 + $0x10] sm:$0x3]  ;;  %v4054_v13 = vld [vmem:[%s4352_s10 + $0x14] sm:$0xff] }
  0x21   : > { %3514 = vmatmul.msk.bf16.gmra.mxu1 %vm447_vm1, %v4359_v10  ;;  %3520 = vmatmul.msk.bf16.gmra.mxu3 %vm447_vm1, %v4380_v30  ;;  %v425_v23 = vrot.slane %v423_v20, 1  ;;  %v439_v40 = vshll.u32 %v4391_v39, 16  ;;  %v1459_v43 = vunpack.c.l.b16 %v1346_v41  ;;  %v1068_v1 = vrot.slane %v4409_v55, 3 }
  0x22   : > { %v433_v33 = vrot.slane %v431_v29, 1  ;;  %1003 = vmatpush.bf16.msra.mxu0 %v994_v8  ;;  %v893_v10 = vshll.u32 %v4413_v56, 16 }
  0x23   : > { %v426_v25 = vsel %vm374_vm3, %v421_v22, %v425_v23  ;;  %v429_v32 = vor.u32 %v427_v28, %v425_v23  ;;  %v441_v47 = vrot.slane %v439_v40, 1  ;;  %v1460_v49 = vpack.c.b16 %v1459_v43, %v1459_v43  ;;  %v4518_v22 = vld [vmem:[%s4352_s10 + $0x3c] sm:$0xff] }
  0x24   : > { %v1070_v23 = vrot.slane %v4426_v4, 3  ;;  %v783_v29 = vrot.slane %v4518_v22, 2  ;;  %v4055_v43 = vld [vmem:[%s4352_s10 + $0x1c] sm:$0xff] }
  0x25   : > { %3523 = vmatmul.msk.bf16.gmra.mxu2 %vm447_vm1, %v605_v37  ;;  %v434_v34 = vsel %vm374_vm3, %v429_v32, %v433_v33  ;;  %v779_v37 = vrot.slane %v4460_v35, 2 }
  0x26   : > { %v1071_v28 = vsel %vm1066_vm5, %v1068_v1, %v1070_v23 }
  0x29   : > { %3506 = vmatmul.msk.bf16.gmra.mxu0 %vm447_vm1, %v394_v38  ;;  %v435_v38 = vshrl.u32 %v4380_v30, 16  ;;  %v1196_v30 = vld [vmem:[%s5423_s2 + $0xc] sm:$0x3] }
  0x2a   : > { %v1262_v39 = vsel %vm472_vm0, %v1196_v30, 0 }
  0x2b   : > { %v437_v46 = vor.u32 %v435_v38, %v433_v33  ;;  %1271 = vmatpush.bf16.msrb.mxu2 %v1262_v39  ;;  %v1072_v39 = vrot.slane %v4438_v17, 3 }
  0x31   : > { %3515 = vmatmul.msk.bf16.gmra.mxu1 %vm447_vm1, %v4040_v14  ;;  %3528 = vmatmul.msk.bf16.vlgmr.msrb.gmra.mxu3 %vm447_vm1, %v615_v45  ;;  %v611_v14 = vsel %vm598_vm2, %v608_v63, %v610_v11  ;;  %v1085_v45 = vunpack.c.l.b16 %v1062_v44  ;;  %v4491_v63 = vld [vmem:[%s4352_s10 + $0x34] sm:$0xff] }
  0x33   : > { %v1086_v50 = vpack.c.b16 %v1085_v45, %v1085_v45 }
  0x35   : > { %3524 = vmatmul.msk.bf16.gmra.mxu2 %vm447_vm1, %v607_v53  ;;  %v1461_v53 = vrot.slane %v1460_v49, 2  ;;  %v1087_v58 = vrot.slane %v1086_v50, 2 }
  0x37   : > { %v1487_v60 = vsel %vm472_vm0, %v1461_v53, 0 }
  0x38   : > { %1496 = vmatpush.bf16.msrb.mxu3 %v1487_v60  ;;  %v1364_v60 = vunpack.c.h.b16 %v4400_v48  ;;  %v4563_v48 = vld [vmem:[%s4352_s10 + $0x14] sm:$0xff] }
  0x39   : > { %3507 = vmatmul.msk.bf16.gmra.mxu0 %vm447_vm1, %v402_v54  ;;  %v1064_v54 = vunpack.c.l.b16 %v1061_v51  ;;  %v4546_v51 = vld [vmem:[%s4352_s10 + $0x10] sm:$0xf] }
  0x3b   : > { %v1065_v61 = vpack.c.b16 %v744_v52, %v1064_v54  ;;  %v781_v52 = vrot.slane %v4491_v63, 2  ;;  %v907_v54 = vshrl.u32 %v4426_v4, 16 }
  0x3d   : > { %v1067_v0 = vrot.slane %v1065_v61, 3  ;;  %v1365_v61 = vunpack.c.l.b16 %v4546_v51 }
  0x41   : > { %3516 = vmatmul.msk.bf16.gmra.mxu1 %vm447_vm1, %v4041_v26  ;;  %3557 = vmatmul.msk.bf16.vlgmr.msra.gmra.mxu3 %vm447_vm1, %v772_v62  ;;  %v4450_v26 = vld [vmem:[%s4352_s10 + $0x24] sm:$0xff]  ;;  %v1113_v62 = vsel %vm472_vm0, %v1087_v58, 0  ;;  %v1073_v58 = vsel %vm1066_vm5, %v1070_v23, %v1072_v39 }
  0x42   : > { %v777_v27 = vrot.slane %v4450_v26, 2  ;;  %1122 = vmatpush.bf16.msrb.mxu1 %v1113_v62 }
  0x44   : > { %v778_v31 = vsel %vm769_vm4, %v775_v18, %v777_v27 }
  0x45   : > { %3525 = vmatmul.msk.bf16.gmra.mxu2 %vm447_vm1, %v609_v2  ;;  %v1069_v2 = vsel %vm1066_vm5, %v1067_v0, %v1068_v1  ;;  %v909_v1 = vrot.slane %v907_v54, 2 }
  0x49   : > { %3508 = vmatmul.msk.bf16.gmra.mxu0 %vm447_vm1, %v410_v3  ;;  %v4209_v3 = vld [vmem:[%s4352_s10] sm:$0xf0] }
  0x4a   : > { %v4211_v6 = vor.u32 %v4210_v5, %v4209_v3 }
  0x4c   : > { %v599_v11 = vrot.slane %v4211_v6, 1 }
  0x4e   : > { %v601_v18 = vsel %vm598_vm2, %v599_v11, %v600_v16  ;;  %v898_v16 = vshrl.u32 %v4409_v55, 16 }
  0x50   : > { %v900_v36 = vrot.slane %v898_v16, 2  ;;  %v1074_v16 = vrot.slane %v4450_v26, 3 }
  0x51   : > { %3517 = vmatmul.msk.bf16.gmra.mxu1 %vm447_vm1, %v4042_v42  ;;  %3558 = vmatmul.msk.bf16.gmra.mxu3 %vm447_vm1, %v774_v9  ;;  %v780_v42 = vsel %vm769_vm4, %v777_v27, %v779_v37  ;;  %v782_v9 = vsel %vm769_vm4, %v779_v37, %v781_v52  ;;  %v901_v27 = vshll.u32 %v4409_v55, 16  ;;  %v784_v37 = vsel %vm769_vm4, %v781_v52, %v783_v29  ;;  %v724_v55 = vld [vmem:[%s4352_s10 + $0x44] sm:$0x3] }
  0x52   : > { %v1381_v52 = vpack.c.b16 %v1365_v61, %v1364_v60 }
  0x54   : > { %v1393_v11 = vshll.u32 %v1381_v52, 16 }
  0x55   : > { %3526 = vmatmul.msk.bf16.gmra.mxu2 %vm447_vm1, %v611_v14 }
  0x59   : > { %3509 = vmatmul.msk.bf16.gmra.mxu0 %vm447_vm1, %v418_v15 }
  0x61   : > { %3518 = vmatmul.msk.bf16.gmra.mxu1 %vm447_vm1, %v4043_v59  ;;  %3559 = vmatmul.msk.bf16.gmra.mxu3 %vm447_vm1, %v776_v21  ;;  %v442_v59 = vsel %vm374_vm3, %v437_v46, %v441_v47  ;;  %v1601_v21 = vsel %vm472_vm0, %v1555_v12, 0  ;;  %v4056_v12 = vld [vmem:[%s4352_s10 + $0x24] sm:$0xff] }
  0x65   : > { %3527 = vmatmul.msk.bf16.gmra.mxu2 %vm447_vm1, %v613_v24  ;;  %v890_v24 = vshrl.u32 %v4413_v56, 16  ;;  %v903_v56 = vrot.slane %v901_v27, 3 }
  0x67   : > { %v892_v33 = vrot.slane %v890_v24, 2  ;;  %v904_v40 = vor.u32 %v903_v56, %v900_v36  ;;  %v1391_v24 = vshrl.u32 %v1381_v52, 16 }
  0x69   : > { %3510 = vmatmul.msk.bf16.gmra.mxu0 %vm447_vm1, %v426_v25 }
  0x71   : > { %3560 = vmatmul.msk.bf16.gmra.mxu3 %vm447_vm1, %v778_v31  ;;  %3573 = vmatmul.msk.bf16.vlgmr.msrb.gmra.mxu1 %vm447_vm1, %v1069_v2 }
  0x75   : > { %3613 = vmatmul.msk.bf16.vlgmr.msrb.gmra.mxu2 %vm447_vm1, %v4053_v57  ;;  %v910_v57 = vshll.u32 %v4426_v4, 16 }
  0x77   : > { %v912_v2 = vrot.slane %v910_v57, 3  ;;  %v1402_v57 = vshrl.u32 %v4563_v48, 16 }
  0x79   : > { %3511 = vmatmul.msk.bf16.gmra.mxu0 %vm447_vm1, %v434_v34  ;;  %v895_v34 = vrot.slane %v893_v10, 3  ;;  %v1398_v10 = vshll.u32 %v4563_v48, 16 }
  0x7b   : > { %v896_v38 = vor.u32 %v895_v34, %v892_v33  ;;  %v919_v33 = vshll.u32 %v4438_v17, 16  ;;  %v1075_v34 = vsel %vm1066_vm5, %v1072_v39, %v1074_v16  ;;  %v1400_v56 = vrot.slane %v1398_v10, 1 }
  0x7d   : > { %v905_v46 = vsel %vm888_vm6, %v896_v38, %v904_v40  ;;  %v921_v38 = vrot.slane %v919_v33, 3 }
  0x81   : > { %3561 = vmatmul.msk.bf16.gmra.mxu3 %vm447_vm1, %v780_v42  ;;  %3574 = vmatmul.msk.bf16.gmra.mxu1 %vm447_vm1, %v1071_v28  ;;  %v759_v42 = vunpack.c.l.b16 %v724_v55 }
  0x83   : > { %v768_v30 = vpack.c.b16 %v759_v42, %v759_v42 }
  0x85   : > { %3614 = vmatmul.msk.bf16.gmra.mxu2 %vm447_vm1, %v4054_v13 }
  0x89   : > { %3512 = vmatmul.msk.bf16.gmra.mxu0 %vm447_vm1, %v442_v59  ;;  %v785_v59 = vrot.slane %v768_v30, 2 }
  0x8b   : > { %v786_v4 = vsel %vm769_vm4, %v783_v29, %v785_v59  ;;  %v916_v29 = vshrl.u32 %v4438_v17, 16  ;;  %v1076_v59 = vrot.slane %v4460_v35, 3 }
  0x8d   : > { %v918_v55 = vrot.slane %v916_v29, 2 }
  0x8e   : > { %v553_v7 = vpop.f32.mrf.mxu1 }
  0x8f   : > { %v922_v17 = vor.u32 %v921_v38, %v918_v55 }
  0x91   : > { %3562 = vmatmul.msk.bf16.gmra.mxu3 %vm447_vm1, %v782_v9  ;;  %3575 = vmatmul.msk.bf16.gmra.mxu1 %vm447_vm1, %v1073_v58 }
  0x94   : > { %v4506_v15 = vpop.f32.mrf.mxu3 }
  0x95   : > { %3615 = vmatmul.msk.bf16.gmra.mxu2 %vm447_vm1, %v4055_v43 }
  0x96   : > { %v485_v14 = vpop.f32.mrf.mxu0  ;;  %v4513_v20 = vpop.f32.mrf.mxu1 }
  0x97   : > { %v4511_v19 = vadd.f32 %v553_v7, %v485_v14  ;;  %v913_v7 = vor.u32 %v912_v2, %v909_v1  ;;  %v928_v1 = vshll.u32 %v4450_v26, 16  ;;  %v1077_v2 = vsel %vm1066_vm5, %v1074_v16, %v1076_v59 }
  0x98   : > { %v657_v25 = vpop.f32.mrf.mxu2 }
  0x99   : > { %3521 = vmatmul.msk.bf16.vlgmr.msrb.gmra.mxu0 %vm447_vm1, %v601_v18  ;;  %v914_v18 = vsel %vm888_vm6, %v904_v40, %v913_v7  ;;  %v923_v39 = vsel %vm888_vm6, %v913_v7, %v922_v17 }
  0x9a   : > { %1610 = vmatpush.bf16.msrb.mxu0 %v1601_v21 }
  0x9c   : > { %v4531_v32 = vpop.f32.mrf.mxu3 }
  0x9e   : > { %v4529_v31 = vpop.f32.mrf.mxu0  ;;  %v558_v8 = vpop.f32.mrf.mxu1 }
  0xa0   : > { %v659_v41 = vpop.f32.mrf.mxu2 }
  0xa1   : > { %3563 = vmatmul.msk.bf16.gmra.mxu3 %vm447_vm1, %v784_v37  ;;  %3576 = vmatmul.msk.bf16.gmra.mxu1 %vm447_vm1, %v1075_v34  ;;  %v1078_v34 = vrot.slane %v4491_v63, 3 }
  0xa3   : > { %v1079_v55 = vsel %vm1066_vm5, %v1076_v59, %v1078_v34  ;;  %v4059_v59 = vld [vmem:[%s4352_s10 + $0x3c] sm:$0xff] }
  0xa4   : > { %v4537_v45 = vpop.f32.mrf.mxu3 }
  0xa5   : > { %3616 = vmatmul.msk.bf16.gmra.mxu2 %vm447_vm1, %v4056_v12 }
  0xa6   : > { %v490_v44 = vpop.f32.mrf.mxu0  ;;  %v560_v49 = vpop.f32.mrf.mxu1 }
  0xa7   : > { %v559_v47 = vadd.f32 %v558_v8, %v490_v44 }
  0xa8   : > { %v662_v53 = vpop.f32.mrf.mxu2 }
  0xa9   : > { %v4542_v50 = vadd.f32 %v657_v25, %v559_v47  ;;  %3565 = vmatmul.msk.bf16.vlgmr.msra.gmra.mxu0 %vm447_vm1, %v905_v46  ;;  %v1395_v25 = vrot.slane %v1393_v11, 1  ;;  %v4588_v46 = vld [vmem:[%s4352_s10 + $0x1c] sm:$0xff]  ;;  %v4057_v47 = vld [vmem:[%s4352_s10 + $0x2c] sm:$0xff]  ;;  %v930_v11 = vrot.slane %v928_v1, 3 }
  0xaa   : > { %v1406_v58 = vshll.u32 %v4588_v46, 16  ;;  %v1410_v29 = vshrl.u32 %v4588_v46, 16 }
  0xab   : > { %v1396_v36 = vor.u32 %v1395_v25, %v1391_v24 }
  0xac   : > { %v4554_v0 = vpop.f32.mrf.mxu3 }
  0xad   : > { %v1401_v42 = vsel %vm374_vm3, %v1396_v36, %v1400_v56 }
  0xae   : > { %v492_v62 = vpop.f32.mrf.mxu0  ;;  %v563_v5 = vpop.f32.mrf.mxu1 }
  0xaf   : > { %v561_v3 = vadd.f32 %v560_v49, %v492_v62  ;;  %v925_v62 = vshrl.u32 %v4450_v26, 16  ;;  %v4614_v26 = vld [vmem:[%s4352_s10 + $0x24] sm:$0xff] }
  0xb0   : > { %v664_v9 = vpop.f32.mrf.mxu2  ;;  %v1414_v33 = vshll.u32 %v4614_v26, 16 }
  0xb1   : > { %v4559_v6 = vadd.f32 %v659_v41, %v561_v3  ;;  %3564 = vmatmul.msk.bf16.gmra.mxu3 %vm447_vm1, %v786_v4  ;;  %3577 = vmatmul.msk.bf16.gmra.mxu1 %vm447_vm1, %v1077_v2  ;;  %v1404_v3 = vor.u32 %v1402_v57, %v1400_v56 }
  0xb4   : > { %v4566_v14 = vpop.f32.mrf.mxu3 }
  0xb5   : > { %3617 = vmatmul.msk.bf16.gmra.mxu2 %vm447_vm1, %v4057_v47 }
  0xb6   : > { %v495_v13 = vpop.f32.mrf.mxu0  ;;  %v565_v23 = vpop.f32.mrf.mxu1 }
  0xb7   : > { %v564_v21 = vadd.f32 %v563_v5, %v495_v13  ;;  %v1408_v5 = vrot.slane %v1406_v58, 1  ;;  %v4644_v58 = vld [vmem:[%s4352_s10 + $0x2c] sm:$0xff] }
  0xb8   : > { %v667_v28 = vpop.f32.mrf.mxu2 }
  0xb9   : > { %v4572_v27 = vadd.f32 %v662_v53, %v564_v21  ;;  %3566 = vmatmul.msk.bf16.gmra.mxu0 %vm447_vm1, %v914_v18  ;;  %v1409_v12 = vsel %vm374_vm3, %v1404_v3, %v1408_v5  ;;  %v4058_v21 = vld [vmem:[%s4352_s10 + $0x34] sm:$0xff]  ;;  %v1412_v38 = vor.u32 %v1410_v29, %v1408_v5 }
  0xbc   : > { %v4579_v37 = vpop.f32.mrf.mxu3 }
  0xbe   : > { %v497_v8 = vpop.f32.mrf.mxu0  ;;  %v568_v41 = vpop.f32.mrf.mxu1 }
  0xbf   : > { %v566_v40 = vadd.f32 %v565_v23, %v497_v8  ;;  %v934_v8 = vshrl.u32 %v4460_v35, 16 }
  0xc0   : > { %v4585_v44 = vpop.f32.mrf.mxu2 }
  0xc1   : > { %v4582_v43 = vadd.f32 %v664_v9, %v566_v40  ;;  %3649 = vmatmul.msk.bf16.vlgmr.msrb.gmra.mxu3 %vm447_vm1, %v1401_v42  ;;  %v927_v9 = vrot.slane %v925_v62, 2  ;;  %3578 = vmatmul.msk.bf16.gmra.mxu1 %vm447_vm1, %v1079_v55  ;;  %v1416_v40 = vrot.slane %v1414_v33, 1  ;;  %v4673_v55 = vld [vmem:[%s4352_s10 + $0x34] sm:$0xff] }
  0xc3   : > { %v931_v18 = vor.u32 %v930_v11, %v927_v9  ;;  %v1080_v9 = vrot.slane %v4518_v22, 3 }
  0xc4   : > { %v4591_v30 = vpop.f32.mrf.mxu3 }
  0xc5   : > { %v932_v25 = vsel %vm888_vm6, %v922_v17, %v931_v18  ;;  %3618 = vmatmul.msk.bf16.gmra.mxu2 %vm447_vm1, %v4058_v21  ;;  %v936_v17 = vrot.slane %v934_v8, 2  ;;  %v883_v8 = vld [vmem:[%s4352_s10 + $0x44] sm:$0x7] }
  0xc6   : > { %v500_v49 = vpop.f32.mrf.mxu0  ;;  %v4594_v54 = vpop.f32.mrf.mxu1 }
  0xc7   : > { %v569_v53 = vadd.f32 %v568_v41, %v500_v49 }
  0xc8   : > { %v672_v4 = vpop.f32.mrf.mxu2 }
  0xc9   : > { %v4600_v60 = vadd.f32 %v667_v28, %v569_v53  ;;  %3567 = vmatmul.msk.bf16.gmra.mxu0 %vm447_vm1, %v923_v39  ;;  %v1417_v39 = vsel %vm374_vm3, %v1412_v38, %v1416_v40 }
  0xcc   : > { %v4609_v7 = vpop.f32.mrf.mxu3 }
  0xce   : > { %v4607_v52 = vpop.f32.mrf.mxu0  ;;  %v573_v13 = vpop.f32.mrf.mxu1 }
  0xd0   : > { %v4621_v28 = vpop.f32.mrf.mxu2 }
  0xd1   : > { %3650 = vmatmul.msk.bf16.gmra.mxu3 %vm447_vm1, %v1409_v12  ;;  %v943_v12 = vshrl.u32 %v4491_v63, 16 }
  0xd4   : > { %v832_v24 = vpop.f32.mrf.mxu3 }
  0xd5   : > { %v4619_v16 = vadd.f32 %v832_v24, %v4542_v50  ;;  %v937_v50 = vshll.u32 %v4460_v35, 16  ;;  %3619 = vmatmul.msk.bf16.gmra.mxu2 %vm447_vm1, %v4059_v59  ;;  %v1430_v59 = vshll.u32 %v4673_v55, 16 }
  0xd6   : > { %v505_v23 = vpop.f32.mrf.mxu0  ;;  %v4630_v56 = vpop.f32.mrf.mxu1 }
  0xd7   : > { %v574_v10 = vadd.f32 %v573_v13, %v505_v23  ;;  %v939_v47 = vrot.slane %v937_v50, 3  ;;  %v946_v13 = vshll.u32 %v4491_v63, 16 }
  0xd8   : > { %v677_v53 = vpop.f32.mrf.mxu2 }
  0xd9   : > { %v4627_v36 = vadd.f32 %v672_v4, %v574_v10  ;;  %3568 = vmatmul.msk.bf16.gmra.mxu0 %vm447_vm1, %v932_v25  ;;  %v940_v57 = vor.u32 %v939_v47, %v936_v17  ;;  %v1422_v4 = vshll.u32 %v4644_v58, 16  ;;  %v945_v10 = vrot.slane %v943_v12, 2 }
  0xda   : > { %v948_v29 = vrot.slane %v946_v13, 3 }
  0xdb   : > { %v941_v2 = vsel %vm888_vm6, %v931_v18, %v940_v57  ;;  %v1424_v23 = vrot.slane %v1422_v4, 1 }
  0xdc   : > { %v834_v42 = vpop.f32.mrf.mxu3  ;;  %v949_v50 = vor.u32 %v948_v29, %v945_v10 }
  0xdd   : > { %v4639_v49 = vadd.f32 %v834_v42, %v4559_v6  ;;  %v1418_v6 = vshrl.u32 %v4614_v26, 16 }
  0xde   : > { %v4636_v41 = vpop.f32.mrf.mxu0  ;;  %v578_v35 = vpop.f32.mrf.mxu1  ;;  %v950_v47 = vsel %vm888_vm6, %v940_v57, %v949_v50  ;;  %v952_v57 = vshrl.u32 %v4518_v22, 16 }
  0xdf   : > { %v1420_v21 = vor.u32 %v1418_v6, %v1416_v40  ;;  %v4060_v40 = vld [vmem:[%s4352_s10 + $0x44] sm:$0xff]  ;;  %v1432_v6 = vrot.slane %v1430_v59, 1 }
  0xe0   : > { %v4661_v18 = vpop.f32.mrf.mxu2 }
  0xe1   : > { %3651 = vmatmul.msk.bf16.gmra.mxu3 %vm447_vm1, %v1417_v39  ;;  %v1425_v63 = vsel %vm374_vm3, %v1420_v21, %v1424_v23  ;;  %v4281_v21 = vmov 0  }
  0xe2   : > { %4252 = vset.pattern.permute.xlu0 %v4281_v21  ;;  %4253 = vset.pattern.permute.xlu1 %v4281_v21 }
  0xe3   : > { %4254 = vset.pattern.permute.xlu2 %v4281_v21  ;;  %v1711_v21 = vld [vmem:[%s5422_s1 + $0x38] sm:$0xff] }
  0xe4   : > { %v837_v1 = vpop.f32.mrf.mxu3 }
  0xe5   : > { %v4649_v5 = vadd.f32 %v837_v1, %v4572_v27  ;;  %v1081_v27 = vsel %vm1066_vm5, %v1078_v34, %v1080_v9  ;;  %v886_v34 = vunpack.c.l.b16 %v883_v8  ;;  %3620 = vmatmul.msk.bf16.gmra.mxu2 %vm447_vm1, %v4060_v40  ;;  %v571_v1 = vadd.f32 %v4594_v54, %v4607_v52 }
  0xe6   : > { %v510_v62 = vpop.f32.mrf.mxu0  ;;  %3579 = vmatmul.msk.bf16.gmra.mxu1 %vm447_vm1, %v1081_v27  ;;  %v954_v52 = vrot.slane %v952_v57, 2  ;;  %v1710_v57 = vld [vmem:[%s5422_s1 + $0x30] sm:$0xff] }
  0xe7   : > { %v579_v3 = vadd.f32 %v578_v35, %v510_v62  ;;  %v887_v39 = vpack.c.b16 %v886_v34, %v886_v34  ;;  %v1426_v35 = vshrl.u32 %v4644_v58, 16  ;;  %v699_v4 = vadd.f32 %v4585_v44, %v571_v1  ;;  %v4704_v44 = vld [vmem:[%s4352_s10 + $0x3c] sm:$0xff] }
  0xe8   : > { %v682_v38 = vpop.f32.mrf.mxu2  ;;  %v1438_v34 = vshll.u32 %v4704_v44, 16  ;;  %v1707_v1 = vld [vmem:[%s5422_s1 + $0x18] sm:$0xff] }
  0xe9   : > { %v4655_v11 = vadd.f32 %v677_v53, %v579_v3  ;;  %3569 = vmatmul.msk.bf16.gmra.mxu0 %vm447_vm1, %v941_v2  ;;  %v1082_v62 = vrot.slane %v887_v39, 3  ;;  %v1428_v3 = vor.u32 %v1426_v35, %v1424_v23  ;;  %v964_v40 = vshll.u32 %v887_v39, 16 }
  0xec   : > { %v839_v25 = vpop.f32.mrf.mxu3 }
  0xed   : > { %v4667_v33 = vadd.f32 %v839_v25, %v4582_v43 }
  0xee   : > { %v4664_v24 = vpop.f32.mrf.mxu0 }
  0xf1   : > { %3652 = vmatmul.msk.bf16.gmra.mxu3 %vm447_vm1, %v1425_v63  ;;  %v1434_v63 = vshrl.u32 %v4673_v55, 16 }
  0xf4   : > { %v842_v17 = vpop.f32.mrf.mxu3 }
  0xf5   : > { %v4679_v43 = vadd.f32 %v842_v17, %v4600_v60  ;;  %v1083_v60 = vsel %vm1066_vm5, %v1080_v9, %v1082_v62  ;;  %v1433_v9 = vsel %vm374_vm3, %v1428_v3, %v1432_v6  ;;  %v1436_v17 = vor.u32 %v1434_v63, %v1432_v6 }
  0xf6   : > { %v515_v42 = vpop.f32.mrf.mxu0  ;;  %3580 = vmatmul.msk.bf16.gmra.mxu1 %vm447_vm1, %v1083_v60 }
  0xf7   : > { %v584_v53 = vadd.f32 %v4506_v15, %v515_v42  ;;  %v955_v15 = vshll.u32 %v4518_v22, 16  ;;  %v1704_v22 = vld [vmem:[%s5422_s1] sm:$0xff]  ;;  %v1706_v42 = vld [vmem:[%s5422_s1 + $0x10] sm:$0xff] }
  0xf8   : > { %1722 = vperm.xlu0 %4252, %v1704_v22   ;;  %1732 = vperm.xlu1 %4253, %v1706_v42  }
  0xf9   : > { %v4686_v2 = vadd.f32 %v682_v38, %v584_v53  ;;  %3570 = vmatmul.msk.bf16.gmra.mxu0 %vm447_vm1, %v950_v47  ;;  %v957_v13 = vrot.slane %v955_v15, 3  ;;  %v961_v38 = vshrl.u32 %v887_v39, 16  ;;  %v966_v39 = vrot.slane %v964_v40, 3  ;;  %v4734_v15 = vld [vmem:[%s4352_s10 + $0x44] sm:$0xff] }
  0xfa   : > { %v1446_v22 = vshll.u32 %v4734_v15, 16 }
  0xfb   : > { %v958_v23 = vor.u32 %v957_v13, %v954_v52  ;;  %v963_v35 = vrot.slane %v961_v38, 2  ;;  %v1554_v52 = vld [vmem:[%s4352_s10 + $0xc] sm:$0xe]  ;;  %v1442_v13 = vshrl.u32 %v4704_v44, 16 }
  0xfc   : > { %v844_v54 = vpop.f32.mrf.mxu3 }
  0xfd   : > { %v4696_v27 = vadd.f32 %v844_v54, %v699_v4  ;;  %v959_v29 = vsel %vm888_vm6, %v949_v50, %v958_v23  ;;  %v1705_v50 = vld [vmem:[%s5422_s1 + $0x8] sm:$0xff]  ;;  %v967_v62 = vor.u32 %v966_v39, %v963_v35 }
  0xfe   : > { %v4694_v12 = vpop.f32.mrf.mxu0 }
  0xff   : > { %v968_v6 = vsel %vm888_vm6, %v958_v23, %v967_v62  ;;  %v1713_v23 = vld [vmem:[%s5422_s1 + $0x48] sm:$0xff] }
 0x100   : > { %1727 = vperm.xlu0 %4252, %v1705_v50   ;;  %1737 = vperm.xlu1 %4253, %v1707_v1   ;;  %v1450_v1 = vshrl.u32 %v4734_v15, 16 }
 0x101   : > { %3653 = vmatmul.msk.bf16.gmra.mxu3 %vm447_vm1, %v1433_v9  ;;  %v1557_v9 = vunpack.c.l.b16 %v1554_v52 }
 0x103   : > { %v1558_v38 = vpack.c.b16 %v1365_v61, %v1557_v9 }
 0x104   : > { %v847_v10 = vpop.f32.mrf.mxu3 }
 0x105   : > { %v4710_v8 = vadd.f32 %v847_v10, %v4627_v36  ;;  %v1440_v36 = vrot.slane %v1438_v34, 1  ;;  %v1448_v10 = vrot.slane %v1446_v22, 1 }
 0x106   : > { %v4706_v25 = vpop.f32.mrf.mxu0 }
 0x107   : > { %v1441_v59 = vsel %vm374_vm3, %v1436_v17, %v1440_v36  ;;  %v1559_v17 = vrot.slane %v1558_v38, 1  ;;  %v589_v9 = vadd.f32 %v4537_v45, %v4706_v25  ;;  %v4080_v45 = vld [vmem:[%s5425_s4 + $0x38] sm:$0xff]  ;;  %v1564_v38 = vrot.slane %v4614_v26, 1  ;;  %v4087_v26 = vld [vmem:[%s5425_s4 + $0x70] sm:$0xff] }
 0x108   : > { %1752 = vperm.xlu0 %4252, %v1710_v57   ;;  %1757 = vperm.xlu1 %4253, %v1711_v21   ;;  %v1562_v21 = vrot.slane %v4588_v46, 1  ;;  %v1709_v46 = vld [vmem:[%s5422_s1 + $0x28] sm:$0xff] }
 0x109   : > { %3571 = vmatmul.msk.bf16.gmra.mxu0 %vm447_vm1, %v959_v29  ;;  %v1345_v29 = vld [vmem:[%s4352_s10 + $0x4c] sm:$0x1]  ;;  %2125 = vmatpush.bf16.msra.mxu2 %v4080_v45 }
 0x10a   : > { %v1380_v50 = vunpack.c.l.b16 %v1345_v29 }
 0x10c   : > { %v4723_v53 = vpop.f32.mrf.mxu3  ;;  %v4767_v35 = vpack.c.b16 %v1380_v50, %v1380_v50  ;;  %v1565_v50 = vsel %vm598_vm2, %v1562_v21, %v1564_v38 }
 0x10e   : > { %v4721_v47 = vpop.f32.mrf.mxu0  ;;  %v1454_v57 = vshll.u32 %v4767_v35, 16 }
 0x110   : > { %1767 = vperm.xlu0 %4252, %v1713_v23   ;;  %v1708_v23 = vld [vmem:[%s5422_s1 + $0x20] sm:$0xff] }
 0x111   : > { %3654 = vmatmul.msk.bf16.gmra.mxu3 %vm447_vm1, %v1441_v59  ;;  %1742 = vperm.xlu2 %4254, %v1708_v23   ;;  %v4881_v23 = vpop.f32.mrf.mxu2 }
 0x114   : > { %v852_v3 = vpop.f32.mrf.mxu3 }
 0x115   : > { %v4739_v54 = vadd.f32 %v852_v3, %v4655_v11  ;;  %v556_v11 = vadd.f32 %v4513_v20, %v4529_v31  ;;  %v1714_v20 = vld [vmem:[%s5422_s1 + $0x50] sm:$0xff]  ;;  %v1716_v31 = vld [vmem:[%s5422_s1 + $0x60] sm:$0xff]  ;;  %v1452_v3 = vor.u32 %v1450_v1, %v1448_v10  ;;  %v4078_v1 = vld [vmem:[%s5425_s4 + $0x28] sm:$0xff] }
 0x116   : > { %v652_v60 = vpop.f32.mrf.mxu0  ;;  %1772 = vperm.xlu1 %4253, %v1714_v20  }
 0x117   : > { %v692_v4 = vadd.f32 %v652_v60, %v4511_v19  ;;  %v1444_v19 = vor.u32 %v1442_v13, %v1440_v36  ;;  %v1560_v36 = vrot.slane %v4563_v48, 1  ;;  %v1717_v60 = vld [vmem:[%s5422_s1 + $0x68] sm:$0xff] }
 0x118   : > { %1782 = vperm.xlu0 %4252, %v1716_v31   ;;  %v1566_v31 = vrot.slane %v4644_v58, 1  ;;  %v4086_v58 = vld [vmem:[%s5425_s4 + $0x68] sm:$0xff] }
 0x119   : > { %3572 = vmatmul.msk.bf16.gmra.mxu0 %vm447_vm1, %v968_v6  ;;  %v1449_v42 = vsel %vm374_vm3, %v1444_v19, %v1448_v10  ;;  %v867_v51 = vadd.f32 %v4591_v30, %v692_v4  ;;  %v1561_v48 = vsel %vm598_vm2, %v1559_v17, %v1560_v36  ;;  %v1719_v30 = vld [vmem:[%s5422_s1 + $0x78] sm:$0xff]  ;;  %v1456_v6 = vrot.slane %v1454_v57, 1  ;;  %1747 = vperm.xlu2 %4254, %v1709_v46  }
 0x11b   : > { %v1457_v22 = vsel %vm374_vm3, %v1452_v3, %v1456_v6  ;;  %v4077_v6 = vld [vmem:[%s5425_s4 + $0x20] sm:$0xff] }
 0x11c   : > { %v4754_v34 = vpop.f32.mrf.mxu3 }
 0x11e   : > { %v654_v63 = vpop.f32.mrf.mxu0  ;;  %1787 = vperm.xlu1 %4253, %v1717_v60   ;;  %v1568_v60 = vrot.slane %v4673_v55, 1  ;;  %v1570_v55 = vrot.slane %v4704_v44, 1  ;;  %v4084_v44 = vld [vmem:[%s5425_s4 + $0x58] sm:$0xff] }
 0x11f   : > { %v693_v40 = vadd.f32 %v654_v63, %v556_v11  ;;  %v1563_v11 = vsel %vm598_vm2, %v1560_v36, %v1562_v21  ;;  %v4079_v36 = vld [vmem:[%s5425_s4 + $0x30] sm:$0xff]  ;;  %v4076_v21 = vld [vmem:[%s5425_s4 + $0x18] sm:$0xff] }
 0x120   : > { %1797 = vperm.xlu0 %4252, %v1719_v30   ;;  %2126 = vmatpush.bf16.msra.mxu2 %v4079_v36  ;;  %v1569_v30 = vsel %vm598_vm2, %v1566_v31, %v1568_v60 }
 0x121   : > { %3655 = vmatmul.msk.bf16.gmra.mxu3 %vm447_vm1, %v1449_v42 }
 0x124   : > { %v857_v39 = vpop.f32.mrf.mxu3  ;;  %2127 = vmatpush.bf16.msra.mxu2 %v4078_v1 }
 0x125   : > { %v4774_v62 = vadd.f32 %v857_v39, %v4686_v2  ;;  %v868_v2 = vadd.f32 %v4609_v7, %v693_v40  ;;  %v706_v7 = vadd.f32 %v4566_v14, %v589_v9  ;;  %v4088_v14 = vld [vmem:[%s5425_s4 + $0x78] sm:$0xff]  ;;  %v1712_v40 = vld [vmem:[%s5422_s1 + $0x40] sm:$0xff]  ;;  %v1567_v39 = vsel %vm598_vm2, %v1564_v38, %v1566_v31 }
 0x126   : > { %v1005_v61 = vpop.f32.mrf.mxu0  ;;  %2032 = vmatpush.bf16.msra.mxu1 %v4088_v14  ;;  %1762 = vperm.xlu2 %4254, %v1712_v40   ;;  %v4073_v31 = vld [vmem:[%s5425_s4] sm:$0xff] }
 0x127   : > { %v4771_v59 = vadd.f32 %v1005_v61, %v867_v51  ;;  %v1718_v51 = vld [vmem:[%s5422_s1 + $0x70] sm:$0xff] }
 0x128   : > { %2128 = vmatpush.bf16.msra.mxu2 %v4077_v6  ;;  %v4093_v6 = vld [vmem:[%s5425_s4 + $0xa0] sm:$0xff] }
 0x129   : > { %3657 = vmatmul.msk.bf16.vlgmr.msrb.gmra.mxu0 %vm447_vm1, %v1561_v48 }
 0x12a   : > { %2033 = vmatpush.bf16.msra.mxu1 %v4087_v26 }
 0x12c   : > { %v4786_v52 = vpop.f32.mrf.mxu3  ;;  %2129 = vmatpush.bf16.msra.mxu2 %v4076_v21 }
 0x12e   : > { %v1007_v4 = vpop.f32.mrf.mxu0  ;;  %2034 = vmatpush.bf16.msra.mxu1 %v4086_v58  ;;  %v4095_v58 = vld [vmem:[%s5425_s4 + $0xb0] sm:$0xff] }
 0x12f   : > { %v4788_v13 = vadd.f32 %v1007_v4, %v868_v2  ;;  %v4872_v4 = vpop.f32.mrf.mxu1 }
 0x131   : > { %3656 = vmatmul.msk.bf16.gmra.mxu3 %vm447_vm1, %v1457_v22  ;;  %v1571_v22 = vsel %vm598_vm2, %v1568_v60, %v1570_v55  ;;  %v4094_v60 = vld [vmem:[%s5425_s4 + $0xa8] sm:$0xff] }
 0x134   : > { %v862_v10 = vpop.f32.mrf.mxu3 }
 0x135   : > { %v4803_v63 = vadd.f32 %v862_v10, %v706_v7 }
 0x136   : > { %v1010_v19 = vpop.f32.mrf.mxu0 }
 0x137   : > { %v4801_v29 = vadd.f32 %v1010_v19, %v4619_v16  ;;  %v1124_v19 = vpop.f32.mrf.mxu1 }
 0x139   : > { %3658 = vmatmul.msk.bf16.gmra.mxu0 %vm447_vm1, %v1563_v11  ;;  %v1572_v11 = vrot.slane %v4734_v15, 1 }
 0x13b   : > { %v1573_v46 = vsel %vm598_vm2, %v1570_v55, %v1572_v11  ;;  %v4139_v55 = vld [vmem:[%s5425_s4 + $0x1b8] sm:$0xff] }
 0x13c   : > { %v4884_v7 = vpop.f32.mrf.mxu3  ;;  %2919 = vmatpush.bf16.msra.mxu0 %v4139_v55  ;;  %v4135_v55 = vld [vmem:[%s5425_s4 + $0x198] sm:$0xff] }
 0x13e   : > { %v1012_v16 = vpop.f32.mrf.mxu0 }
 0x13f   : > { %v4816_v25 = vadd.f32 %v1012_v16, %v4639_v49  ;;  %v1715_v49 = vld [vmem:[%s5422_s1 + $0x58] sm:$0xff]  ;;  %v1126_v16 = vpop.f32.mrf.mxu1 }
 0x140   : > { %1777 = vperm.xlu2 %4254, %v1715_v49   ;;  %v1574_v49 = vrot.slane %v4767_v35, 1 }
 0x144   : > { %v1498_v45 = vpop.f32.mrf.mxu3 }
 0x146   : > { %v1015_v42 = vpop.f32.mrf.mxu0 }
 0x147   : > { %v4824_v17 = vadd.f32 %v1015_v42, %v4649_v5  ;;  %v4075_v42 = vld [vmem:[%s5425_s4 + $0x10] sm:$0xff]  ;;  %v1129_v26 = vpop.f32.mrf.mxu1 }
 0x148   : > { %1792 = vperm.xlu2 %4254, %v1718_v51   ;;  %2130 = vmatpush.bf16.msra.mxu2 %v4075_v42 }
 0x149   : > { %3659 = vmatmul.msk.bf16.gmra.mxu0 %vm447_vm1, %v1565_v50  ;;  %v4083_v50 = vld [vmem:[%s5425_s4 + $0x50] sm:$0xff] }
 0x14c   : > { %v1500_v15 = vpop.f32.mrf.mxu3 }
 0x14e   : > { %v1017_v20 = vpop.f32.mrf.mxu0 }
 0x14f   : > { %v4837_v5 = vadd.f32 %v1017_v20, %v4667_v33  ;;  %v4096_v20 = vld [vmem:[%s5425_s4 + $0xb8] sm:$0xff] }
 0x150   : > { %2251 = vmatpush.bf16.msra.mxu3 %v4096_v20 }
 0x154   : > { %v4921_v35 = vpop.f32.mrf.mxu3  ;;  %2252 = vmatpush.bf16.msra.mxu3 %v4095_v58 }
 0x156   : > { %v1020_v61 = vpop.f32.mrf.mxu0 }
 0x157   : > { %v4845_v48 = vadd.f32 %v1020_v61, %v4679_v43 }
 0x158   : > { %2253 = vmatpush.bf16.msra.mxu3 %v4094_v60 }
 0x159   : > { %3660 = vmatmul.msk.bf16.gmra.mxu0 %vm447_vm1, %v1567_v39  ;;  %v1575_v39 = vsel %vm598_vm2, %v1572_v11, %v1574_v49  ;;  %v4138_v11 = vld [vmem:[%s5425_s4 + $0x1b0] sm:$0xff] }
 0x15a   : > { %2920 = vmatpush.bf16.msra.mxu0 %v4138_v11 }
 0x15c   : > { %2254 = vmatpush.bf16.msra.mxu3 %v4093_v6 }
 0x15e   : > { %v1022_v33 = vpop.f32.mrf.mxu0 }
 0x15f   : > { %v4855_v57 = vadd.f32 %v1022_v33, %v4696_v27  ;;  %v4085_v27 = vld [vmem:[%s5425_s4 + $0x60] sm:$0xff]  ;;  %v1131_v33 = vpop.f32.mrf.mxu1 }
 0x160   : > { %2035 = vmatpush.bf16.msra.mxu1 %v4085_v27  ;;  %v1164_v27 = vadd.f32 %v1124_v19, %v4771_v59  ;;  %v1165_v59 = vadd.f32 %v1126_v16, %v4788_v13  ;;  %v4090_v16 = vld [vmem:[%s5425_s4 + $0x88] sm:$0xff] }
 0x164   : > { %2036 = vmatpush.bf16.msra.mxu1 %v4084_v44 }
 0x166   : > { %v1025_v43 = vpop.f32.mrf.mxu0 }
 0x167   : > { %v4860_v3 = vadd.f32 %v1025_v43, %v4710_v8  ;;  %v4082_v43 = vld [vmem:[%s5425_s4 + $0x48] sm:$0xff]  ;;  %v4947_v44 = vpop.f32.mrf.mxu1 }
 0x168   : > { %2037 = vmatpush.bf16.msra.mxu1 %v4083_v50 }
 0x169   : > { %3661 = vmatmul.msk.bf16.gmra.mxu0 %vm447_vm1, %v1569_v30 }
 0x16a   : > { %v1723_v49 = vpop.permute.xlu0 %1722 }
 0x16c   : > { %2038 = vmatpush.bf16.msra.mxu1 %v4082_v43  ;;  %v1166_v43 = vadd.f32 %v1129_v26, %v4801_v29  ;;  %v4134_v29 = vld [vmem:[%s5425_s4 + $0x190] sm:$0xff] }
 0x16e   : > { %v4869_v2 = vpop.f32.mrf.mxu0 }
 0x172   : > { %v1728_v11 = vpop.permute.xlu0 %1727 }
 0x176   : > { %v1030_v8 = vpop.f32.mrf.mxu0 }
 0x177   : > { %v4876_v9 = vadd.f32 %v1030_v8, %v4739_v54  ;;  %v1273_v54 = vpop.f32.mrf.mxu2  ;;  %v1505_v8 = vpop.f32.mrf.mxu3 }
 0x178   : > { %v1313_v21 = vadd.f32 %v1273_v54, %v1164_v27  ;;  %v4961_v54 = vld [vmem:[%s5424_s3] ss:$0 sm:$0xff] }
 0x179   : > { %3662 = vmatmul.msk.bf16.gmra.mxu0 %vm447_vm1, %v1571_v22  ;;  %v4092_v22 = vld [vmem:[%s5425_s4 + $0x98] sm:$0xff] }
 0x17a   : > { %2255 = vmatpush.bf16.msra.mxu3 %v4092_v22  ;;  %v1538_v19 = vadd.f32 %v1498_v45, %v1313_v21 }
 0x17e   : > { %v4889_v10 = vpop.f32.mrf.mxu0 }
 0x17f   : > { %v1275_v40 = vpop.f32.mrf.mxu2  ;;  %v4966_v45 = vpop.f32.mrf.mxu3 }
 0x180   : > { %v1314_v13 = vadd.f32 %v1275_v40, %v1165_v59  ;;  %v1136_v40 = vpop.f32.mrf.mxu1 }
 0x182   : > { %v1539_v20 = vadd.f32 %v1500_v15, %v1314_v13  ;;  %v4089_v15 = vld [vmem:[%s5425_s4 + $0x80] sm:$0xff] }
 0x186   : > { %v1035_v14 = vpop.f32.mrf.mxu0 }
 0x187   : > { %v4894_v38 = vadd.f32 %v1035_v14, %v4774_v62  ;;  %v4074_v62 = vld [vmem:[%s5425_s4 + $0x8] sm:$0xff]  ;;  %v4915_v51 = vpop.f32.mrf.mxu2  ;;  %v1510_v26 = vpop.f32.mrf.mxu3 }
 0x188   : > { %2131 = vmatpush.bf16.msra.mxu2 %v4074_v62  ;;  %v4137_v62 = vld [vmem:[%s5425_s4 + $0x1a8] sm:$0xff] }
 0x189   : > { %3663 = vmatmul.msk.bf16.gmra.mxu0 %vm447_vm1, %v1573_v46  ;;  %v4091_v46 = vld [vmem:[%s5425_s4 + $0x90] sm:$0xff] }
 0x18a   : > { %2256 = vmatpush.bf16.msra.mxu3 %v4091_v46  ;;  %2921 = vmatpush.bf16.msra.mxu0 %v4137_v62 }
 0x18c   : > { %2132 = vmatpush.bf16.msra.mxu2 %v4073_v31 }
 0x18e   : > { %v4903_v36 = vpop.f32.mrf.mxu0  ;;  %2257 = vmatpush.bf16.msra.mxu3 %v4090_v16  ;;  %v1139_v16 = vpop.f32.mrf.mxu1 }
 0x18f   : > { %v4935_v30 = vpop.f32.mrf.mxu2 }
 0x192   : > { %2258 = vmatpush.bf16.msra.mxu3 %v4089_v15 }
 0x196   : > { %v1040_v61 = vpop.f32.mrf.mxu0 }
 0x197   : > { %v4919_v1 = vadd.f32 %v1040_v61, %v4803_v63  ;;  %v4956_v42 = vpop.f32.mrf.mxu2  ;;  %v4081_v61 = vld [vmem:[%s5425_s4 + $0x40] sm:$0xff] }
 0x198   : > { %2039 = vmatpush.bf16.msra.mxu1 %v4081_v61  ;;  %v4117_v61 = vld [vmem:[%s5425_s4 + $0x138] sm:$0xff] }
 0x199   : > { %3664 = vmatmul.msk.bf16.gmra.mxu0 %vm447_vm1, %v1575_v39  ;;  %v4136_v39 = vld [vmem:[%s5425_s4 + $0x1a0] sm:$0xff]  ;;  %2618 = vmatpush.bf16.msrb.mxu2 %v4117_v61 }
 0x19a   : > { %2922 = vmatpush.bf16.msra.mxu0 %v4136_v39  ;;  %v4109_v39 = vld [vmem:[%s5425_s4 + $0xf8] sm:$0xff] }
 0x19c   : > { %2431 = vmatpush.bf16.msrb.mxu1 %v4109_v39 }
 0x19e   : > { %v4933_v63 = vpop.f32.mrf.mxu0  ;;  %2923 = vmatpush.bf16.msra.mxu0 %v4135_v55 }
 0x19f   : > { %v1285_v22 = vpop.f32.mrf.mxu2 }
 0x1a2   : > { %2924 = vmatpush.bf16.msra.mxu0 %v4134_v29  ;;  %v1169_v29 = vadd.f32 %v1136_v40, %v4837_v5 }
 0x1a6   : > { %v1612_v14 = vpop.f32.mrf.mxu0 }
 0x1a7   : > { %v1652_v50 = vadd.f32 %v1612_v14, %v1538_v19  ;;  %v1315_v14 = vadd.f32 %v4915_v51, %v1166_v43  ;;  %v4133_v51 = vld [vmem:[%s5425_s4 + $0x188] sm:$0xff] }
 0x1a8   : > { %2925 = vmatpush.bf16.msra.mxu0 %v4133_v51  ;;  %v1743_v51 = vpop.permute.xlu2 %1742 }
 0x1a9   : > { %v1672_v31 = vadd.f32 %v4961_v54, %v1652_v50  ;;  %v1167_v50 = vadd.f32 %v1131_v33, %v4816_v25  ;;  %v1540_v62 = vadd.f32 %v4921_v35, %v1315_v14  ;;  %v1288_v25 = vpop.f32.mrf.mxu2 }
 0x1ab   : > { %v1688_v6 = vmax.f32 %v1672_v31, 0.0  ;;  %v1316_v31 = vadd.f32 %v4935_v30, %v1167_v50  ;;  %v1513_v30 = vpop.f32.mrf.mxu3 }
 0x1ad   : > { %v1800_v59 = vmul.f32 %v1723_v49, %v1688_v6  ;;  %v1733_v49 = vpop.permute.xlu1 %1732  ;;  %v1541_v33 = vadd.f32 %v1505_v8, %v1316_v31  ;;  %v1168_v8 = vadd.f32 %v4947_v44, %v4824_v17  ;;  %v4116_v17 = vld [vmem:[%s5425_s4 + $0x130] sm:$0xff]  ;;  %v1318_v31 = vadd.f32 %v1285_v22, %v1169_v29 }
 0x1ae   : > { %v1614_v58 = vpop.f32.mrf.mxu0  ;;  %2619 = vmatpush.bf16.msrb.mxu2 %v4116_v17  ;;  %v1170_v22 = vadd.f32 %v1139_v16, %v4845_v48 }
 0x1af   : > { %v1653_v60 = vadd.f32 %v1614_v58, %v1539_v20  ;;  %v4132_v58 = vld [vmem:[%s5425_s4 + $0x180] sm:$0xff]  ;;  %v1543_v5 = vadd.f32 %v1510_v26, %v1318_v31 }
 0x1b0   : > { %2926 = vmatpush.bf16.msra.mxu0 %v4132_v58 }
 0x1b1   : > { %v1673_v27 = vadd.f32 %v4961_v54, %v1653_v60 }
 0x1b3   : > { %v1689_v21 = vmax.f32 %v1673_v27, 0.0  ;;  %v1141_v27 = vpop.f32.mrf.mxu1  ;;  %v1515_v44 = vpop.f32.mrf.mxu3 }
 0x1b5   : > { %v1801_v19 = vmul.f32 %v1728_v11, %v1689_v21  ;;  %v1738_v21 = vpop.permute.xlu1 %1737  ;;  %v1317_v11 = vadd.f32 %v4956_v42, %v1168_v8 }
 0x1b6   : > { %v1617_v46 = vpop.f32.mrf.mxu0 }
 0x1b7   : > { %v4992_v13 = vpack.c.bf16 %v1801_v19, %v1800_v59  ;;  %v1654_v20 = vadd.f32 %v1617_v46, %v1540_v62  ;;  %v1290_v46 = vpop.f32.mrf.mxu2  ;;  %v1542_v50 = vadd.f32 %v4966_v45, %v1317_v11  ;;  %v4108_v45 = vld [vmem:[%s5425_s4 + $0xf0] sm:$0xff] }
 0x1b8   : > { %2432 = vmatpush.bf16.msrb.mxu1 %v4108_v45 }
 0x1b9   : > { %4169 = vst [vmem:[#allocation2] sm:$0xff] %v4992_v13   ;;  %2133 = vmatmul.bf16.vlgmr.msra.gmra.mxu2 %v4992_v13  ;;  %v1674_v35 = vadd.f32 %v4961_v54, %v1654_v20  ;;  %v1927_v26 = vshrl.u32 %v4992_v13, 16 }
 0x1bb   : > { %v1690_v43 = vmax.f32 %v1674_v35, 0.0  ;;  %v1144_v35 = vpop.f32.mrf.mxu1 }
 0x1bd   : > { %v1802_v14 = vmul.f32 %v1733_v49, %v1690_v43  ;;  %v1929_v49 = vshll.u32 %v4992_v13, 16  ;;  %v1171_v13 = vadd.f32 %v1141_v27, %v4855_v57  ;;  %v4114_v27 = vld [vmem:[%s5425_s4 + $0x120] sm:$0xff] }
 0x1be   : > { %v1619_v60 = vpop.f32.mrf.mxu0 }
 0x1bf   : > { %v1655_v15 = vadd.f32 %v1619_v60, %v1541_v33  ;;  %v1931_v60 = vrot.slane %v1929_v49, 1  ;;  %v1293_v8 = vpop.f32.mrf.mxu2  ;;  %v1320_v45 = vadd.f32 %v1290_v46, %v1171_v13  ;;  %v1172_v46 = vadd.f32 %v1144_v35, %v4860_v3 }
 0x1c0   : > { %v4219_v33 = vld [vmem:[#allocation2] sm:$0xf0]  ;;  %v4220_v42 = vld [vmem:[#allocation2] sm:$0xe] }
 0x1c1   : > { %v1675_v6 = vadd.f32 %v4961_v54, %v1655_v15  ;;  %v4221_v39 = vor.u32 %v4220_v42, %v4219_v33  ;;  %v1932_v29 = vor.u32 %v1931_v60, %v1927_v26  ;;  %v1545_v57 = vadd.f32 %v1515_v44, %v1320_v45 }
 0x1c3   : > { %v1691_v55 = vmax.f32 %v1675_v6, 0.0  ;;  %v1146_v33 = vpop.f32.mrf.mxu1 }
 0x1c5   : > { %v1803_v59 = vmul.f32 %v1738_v21, %v1691_v55  ;;  %v2184_v55 = vrot.slane %v4221_v39, 1 }
 0x1c6   : > { %v1622_v19 = vpop.f32.mrf.mxu0 }
 0x1c7   : > { %v4173_v62 = vpack.c.bf16 %v1803_v59, %v1802_v14  ;;  %v1656_v20 = vadd.f32 %v1622_v19, %v1542_v50  ;;  %v1518_v59 = vpop.f32.mrf.mxu3  ;;  %v1748_v19 = vpop.permute.xlu2 %1747 }
 0x1c9   : > { %4212 = vst [vmem:[#allocation2 + $0x8] sm:$0xff] %v4173_v62   ;;  %v1676_v40 = vadd.f32 %v4961_v54, %v1656_v20  ;;  %v1319_v20 = vadd.f32 %v1288_v25, %v1170_v22  ;;  %v4107_v25 = vld [vmem:[%s5425_s4 + $0xe8] sm:$0xff] }
 0x1ca   : > { %2433 = vmatpush.bf16.msrb.mxu1 %v4107_v25 }
 0x1cb   : > { %v1692_v43 = vmax.f32 %v1676_v40, 0.0  ;;  %v1544_v42 = vadd.f32 %v1513_v30, %v1319_v20  ;;  %v4115_v40 = vld [vmem:[%s5425_s4 + $0x128] sm:$0xff]  ;;  %v1149_v44 = vpop.f32.mrf.mxu1  ;;  %v1321_v20 = vadd.f32 %v1293_v8, %v1172_v46  ;;  %v581_v8 = vadd.f32 %v4872_v4, %v4664_v24 }
 0x1cc   : > { %2620 = vmatpush.bf16.msrb.mxu2 %v4115_v40 }
 0x1cd   : > { %v1804_v17 = vmul.f32 %v1743_v51, %v1692_v43  ;;  %v576_v51 = vadd.f32 %v4630_v56, %v4636_v41 }
 0x1ce   : > { %v1624_v61 = vpop.f32.mrf.mxu0 }
 0x1cf   : > { %v1657_v58 = vadd.f32 %v1624_v61, %v1543_v5  ;;  %v1295_v61 = vpop.f32.mrf.mxu2  ;;  %v1520_v39 = vpop.f32.mrf.mxu3  ;;  %v701_v60 = vadd.f32 %v4621_v28, %v576_v51 }
 0x1d0   : > { %v4068_v15 = vld [vmem:[#allocation2 + $0x8] sm:$0xff]  ;;  %2621 = vmatpush.bf16.msrb.mxu2 %v4114_v27 }
 0x1d1   : > { %v1677_v6 = vadd.f32 %v4961_v54, %v1657_v58  ;;  %2138 = vmatmul.bf16.gmra.mxu2 %v4068_v15  ;;  %v2185_v21 = vrot.slane %v4068_v15, 1  ;;  %v1934_v11 = vshll.u32 %v4068_v15, 16  ;;  %v876_v41 = vadd.f32 %v4723_v53, %v701_v60 }
 0x1d3   : > { %v1693_v14 = vmax.f32 %v1677_v6, 0.0  ;;  %v2186_v50 = vsel %vm598_vm2, %v2184_v55, %v2185_v21  ;;  %v1936_v62 = vrot.slane %v1934_v11, 1  ;;  %v1938_v11 = vshrl.u32 %v4068_v15, 16  ;;  %v1151_v40 = vpop.f32.mrf.mxu1 }
 0x1d4   : > { %2259 = vmatmul.bf16.vlgmr.msra.gmra.mxu3 %v2186_v50  ;;  %v1758_v50 = vpop.permute.xlu1 %1757 }
 0x1d5   : > { %v1805_v48 = vmul.f32 %v1748_v19, %v1693_v14  ;;  %v1937_v31 = vsel %vm374_vm3, %v1932_v29, %v1936_v62  ;;  %v1054_v14 = vadd.f32 %v4869_v2, %v876_v41  ;;  %v1753_v29 = vpop.permute.xlu0 %1752  ;;  %v1940_v3 = vor.u32 %v1938_v11, %v1936_v62 }
 0x1d6   : > { %v1627_v16 = vpop.f32.mrf.mxu0  ;;  %2040 = vmatmul.bf16.vlgmr.msra.gmra.mxu1 %v1937_v31 }
 0x1d7   : > { %v4178_v49 = vpack.c.bf16 %v1805_v48, %v1804_v17  ;;  %v1658_v5 = vadd.f32 %v1627_v16, %v1544_v42  ;;  %v1298_v17 = vpop.f32.mrf.mxu2  ;;  %v1173_v15 = vadd.f32 %v1146_v33, %v1054_v14  ;;  %v1546_v42 = vadd.f32 %v1518_v59, %v1321_v20  ;;  %v1523_v2 = vpop.f32.mrf.mxu3  ;;  %v4113_v59 = vld [vmem:[%s5425_s4 + $0x118] sm:$0xff] }
 0x1d8   : > { %v4105_v33 = vld [vmem:[%s5425_s4 + $0xd8] sm:$0xff]  ;;  %2622 = vmatpush.bf16.msrb.mxu2 %v4113_v59 }
 0x1d9   : > { %4213 = vst [vmem:[#allocation2 + $0x10] sm:$0xff] %v4178_v49   ;;  %v1678_v30 = vadd.f32 %v4961_v54, %v1658_v5  ;;  %v1322_v62 = vadd.f32 %v1295_v61, %v1173_v15 }
 0x1db   : > { %v1694_v6 = vmax.f32 %v1678_v30, 0.0  ;;  %v1547_v25 = vadd.f32 %v1520_v39, %v1322_v62  ;;  %v1174_v39 = vadd.f32 %v1149_v44, %v4876_v9  ;;  %v1154_v14 = vpop.f32.mrf.mxu1  ;;  %v4123_v62 = vld [vmem:[%s5425_s4 + $0x168] sm:$0xff] }
 0x1dc   : > { %v1176_v59 = vadd.f32 %v1154_v14, %v4894_v38  ;;  %v591_v14 = vadd.f32 %v4554_v0, %v4721_v47  ;;  %v2302_v47 = vld [vmem:[#allocation2 + $0x4] sm:$0xc] }
 0x1dd   : > { %v1806_v48 = vmul.f32 %v1753_v29, %v1694_v6 }
 0x1de   : > { %v1629_v58 = vpop.f32.mrf.mxu0 }
 0x1df   : > { %v1659_v22 = vadd.f32 %v1629_v58, %v1545_v57  ;;  %v703_v57 = vadd.f32 %v4661_v18, %v581_v8  ;;  %v1300_v30 = vpop.f32.mrf.mxu2 }
 0x1e0   : > { %v5043_v43 = vld [vmem:[#allocation2 + $0x10] sm:$0xff] }
 0x1e1   : > { %v4126_v56 = vld [vmem:[#allocation2 + $0xc] sm:$0xff]  ;;  %v1679_v26 = vadd.f32 %v4961_v54, %v1659_v22  ;;  %2143 = vmatmul.bf16.gmra.mxu2 %v5043_v43  ;;  %v2187_v55 = vrot.slane %v5043_v43, 1  ;;  %v1942_v28 = vshll.u32 %v5043_v43, 16  ;;  %v878_v61 = vadd.f32 %v4754_v34, %v703_v57  ;;  %v1525_v22 = vpop.f32.mrf.mxu3  ;;  %v1763_v34 = vpop.permute.xlu2 %1762 }
 0x1e2   : > { %2927 = vmatmul.bf16.vlgmr.msra.gmra.mxu0 %v4126_v56  ;;  %v1946_v56 = vshrl.u32 %v5043_v43, 16  ;;  %v4112_v43 = vld [vmem:[%s5425_s4 + $0x110] sm:$0xff] }
 0x1e3   : > { %v1695_v19 = vmax.f32 %v1679_v26, 0.0  ;;  %v2188_v53 = vsel %vm598_vm2, %v2185_v21, %v2187_v55  ;;  %v1944_v35 = vrot.slane %v1942_v28, 1  ;;  %v4106_v21 = vld [vmem:[%s5425_s4 + $0xe0] sm:$0xff]  ;;  %v1056_v46 = vadd.f32 %v4889_v10, %v878_v61  ;;  %v1768_v26 = vpop.permute.xlu0 %1767  ;;  %2623 = vmatpush.bf16.msrb.mxu2 %v4112_v43 }
 0x1e4   : > { %2264 = vmatmul.bf16.gmra.mxu3 %v2188_v53  ;;  %2434 = vmatpush.bf16.msrb.mxu1 %v4106_v21  ;;  %v1323_v28 = vadd.f32 %v1298_v17, %v1174_v39  ;;  %v1156_v21 = vpop.f32.mrf.mxu1  ;;  %v4102_v43 = vld [vmem:[%s5425_s4 + $0xc0] sm:$0xff] }
 0x1e5   : > { %v1807_v16 = vmul.f32 %v1758_v50, %v1695_v19  ;;  %v1945_v13 = vsel %vm374_vm3, %v1940_v3, %v1944_v35  ;;  %v1948_v44 = vor.u32 %v1946_v56, %v1944_v35  ;;  %v1175_v53 = vadd.f32 %v1151_v40, %v1056_v46 }
 0x1e6   : > { %v1632_v31 = vpop.f32.mrf.mxu0  ;;  %2045 = vmatmul.bf16.gmra.mxu1 %v1945_v13  ;;  %v1548_v3 = vadd.f32 %v1523_v2, %v1323_v28  ;;  %v4124_v13 = vld [vmem:[%s5425_s4 + $0x170] sm:$0xff]  ;;  %v4103_v28 = vld [vmem:[%s5425_s4 + $0xc8] sm:$0xff] }
 0x1e7   : > { %v4183_v49 = vpack.c.bf16 %v1807_v16, %v1806_v48  ;;  %v1660_v5 = vadd.f32 %v1632_v31, %v1546_v42  ;;  %v1303_v35 = vpop.f32.mrf.mxu2  ;;  %v4111_v48 = vld [vmem:[%s5425_s4 + $0x108] sm:$0xff]  ;;  %v586_v16 = vadd.f32 %v4531_v32, %v4694_v12  ;;  %v1324_v31 = vadd.f32 %v1300_v30, %v1175_v53  ;;  %v4104_v2 = vld [vmem:[%s5425_s4 + $0xd0] sm:$0xff] }
 0x1e8   : > { %2435 = vmatpush.bf16.msrb.mxu1 %v4105_v33  ;;  %2624 = vmatpush.bf16.msrb.mxu2 %v4111_v48  ;;  %v1325_v56 = vadd.f32 %v1303_v35, %v1176_v59 }
 0x1e9   : > { %4214 = vst [vmem:[#allocation2 + $0x18] sm:$0xff] %v4183_v49   ;;  %v1680_v51 = vadd.f32 %v4961_v54, %v1660_v5  ;;  %v1528_v15 = vpop.f32.mrf.mxu3  ;;  %v1549_v42 = vadd.f32 %v1525_v22, %v1324_v31  ;;  %v4110_v5 = vld [vmem:[%s5425_s4 + $0x100] sm:$0xff]  ;;  %v705_v12 = vadd.f32 %v4881_v23, %v586_v16  ;;  %v1778_v39 = vpop.permute.xlu2 %1777 }
 0x1ea   : > { %v4122_v22 = vld [vmem:[%s5425_s4 + $0x160] sm:$0xff] }
 0x1eb   : > { %v1696_v58 = vmax.f32 %v1680_v51, 0.0  ;;  %v880_v51 = vadd.f32 %v4786_v52, %v705_v12  ;;  %v1773_v52 = vpop.permute.xlu1 %1772  ;;  %v4160_v12 = vld [vmem:[%s5425_s4 + $0x238] sm:$0xff] }
 0x1ec   : > { %2436 = vmatpush.bf16.msrb.mxu1 %v4104_v2  ;;  %2625 = vmatpush.bf16.msrb.mxu2 %v4110_v5  ;;  %v2344_v2 = vunpack.c.l.b16 %v2302_v47  ;;  %v4151_v47 = vld [vmem:[%s5425_s4 + $0x1f0] sm:$0xff] }
 0x1ed   : > { %v1808_v19 = vmul.f32 %v1763_v34, %v1696_v58  ;;  %v1550_v34 = vadd.f32 %v1528_v15, %v1325_v56 }
 0x1ee   : > { %v1634_v45 = vpop.f32.mrf.mxu0 }
 0x1ef   : > { %v1661_v27 = vadd.f32 %v1634_v45, %v1547_v25 }
 0x1f0   : > { %v5067_v24 = vld [vmem:[#allocation2 + $0x18] sm:$0xff]  ;;  %2437 = vmatpush.bf16.msrb.mxu1 %v4103_v28  ;;  %3276 = vmatpush.bf16.msra.mxu2 %v4160_v12 }
 0x1f1   : > { %v4127_v4 = vld [vmem:[#allocation2 + $0x14] sm:$0xff]  ;;  %v1681_v60 = vadd.f32 %v4961_v54, %v1661_v27  ;;  %2148 = vmatmul.bf16.gmra.mxu2 %v5067_v24  ;;  %v2189_v18 = vrot.slane %v5067_v24, 1  ;;  %v1950_v41 = vshll.u32 %v5067_v24, 16  ;;  %v1954_v57 = vshrl.u32 %v5067_v24, 16  ;;  %v1530_v46 = vpop.f32.mrf.mxu3 }
 0x1f2   : > { %2932 = vmatmul.bf16.gmra.mxu0 %v4127_v4  ;;  %v1058_v27 = vadd.f32 %v4903_v36, %v880_v51  ;;  %v1305_v4 = vpop.f32.mrf.mxu2  ;;  %v1783_v51 = vpop.permute.xlu0 %1782 }
 0x1f3   : > { %v1697_v6 = vmax.f32 %v1681_v60, 0.0  ;;  %v2190_v9 = vsel %vm598_vm2, %v2187_v55, %v2189_v18  ;;  %v1952_v11 = vrot.slane %v1950_v41, 1  ;;  %v4125_v55 = vld [vmem:[%s5425_s4 + $0x178] sm:$0xff]  ;;  %v1788_v59 = vpop.permute.xlu1 %1787 }
 0x1f4   : > { %2269 = vmatmul.bf16.gmra.mxu3 %v2190_v9  ;;  %v1177_v24 = vadd.f32 %v1156_v21, %v1058_v27  ;;  %v4121_v9 = vld [vmem:[%s5425_s4 + $0x158] sm:$0xff]  ;;  %2438 = vmatpush.bf16.msrb.mxu1 %v4102_v43 }
 0x1f5   : > { %v1809_v29 = vmul.f32 %v1768_v26, %v1697_v6  ;;  %v1953_v10 = vsel %vm374_vm3, %v1948_v44, %v1952_v11  ;;  %2756 = vmatpush.bf16.msrb.mxu3 %v4125_v55  ;;  %v1956_v58 = vor.u32 %v1954_v57, %v1952_v11  ;;  %v1159_v44 = vpop.f32.mrf.mxu1 }
 0x1f6   : > { %v1637_v50 = vpop.f32.mrf.mxu0  ;;  %2050 = vmatmul.bf16.gmra.mxu1 %v1953_v10  ;;  %v1178_v16 = vadd.f32 %v1159_v44, %v4919_v1 }
 0x1f7   : > { %v4188_v20 = vpack.c.bf16 %v1809_v29, %v1808_v19  ;;  %v1662_v17 = vadd.f32 %v1637_v50, %v1548_v3  ;;  %v4120_v19 = vld [vmem:[%s5425_s4 + $0x150] sm:$0xff]  ;;  %v1326_v29 = vadd.f32 %v1305_v4, %v1177_v24  ;;  %v5142_v50 = vld [vmem:[#allocation2 + $0x8] sm:$0xff]   ;;  %v707_v3 = vadd.f32 %v4579_v37, %v591_v14 }
 0x1f8   : > { %v2345_v35 = vunpack.c.l.b16 %v5142_v50 }
 0x1f9   : > { %4215 = vst [vmem:[#allocation2 + $0x20] sm:$0xff] %v4188_v20   ;;  %v1682_v49 = vadd.f32 %v4961_v54, %v1662_v17  ;;  %2757 = vmatpush.bf16.msrb.mxu3 %v4124_v13  ;;  %v1551_v10 = vadd.f32 %v1530_v46, %v1326_v29  ;;  %v4119_v17 = vld [vmem:[%s5425_s4 + $0x148] sm:$0xff]  ;;  %v882_v48 = vadd.f32 %v4884_v7, %v707_v3  ;;  %v1533_v31 = vpop.f32.mrf.mxu3 }
 0x1fa   : > { %v1308_v20 = vpop.f32.mrf.mxu2 }
 0x1fb   : > { %v1698_v33 = vmax.f32 %v1682_v49, 0.0  ;;  %v5155_v49 = vld [vmem:[#allocation2 + $0xc] sm:$0xff]  ;;  %v1060_v5 = vadd.f32 %v4933_v63, %v882_v48  ;;  %v4118_v63 = vld [vmem:[%s5425_s4 + $0x140] sm:$0xff]  ;;  %v1798_v48 = vpop.permute.xlu0 %1797 }
 0x1fc   : > { %v2511_v4 = vshrl.u32 %v5155_v49, 16 }
 0x1fd   : > { %2758 = vmatpush.bf16.msrb.mxu3 %v4123_v62  ;;  %v1810_v41 = vmul.f32 %v1773_v52, %v1698_v33  ;;  %v1161_v21 = vpop.f32.mrf.mxu1  ;;  %v5167_v62 = vpack.c.b16 %v2345_v35, %v2344_v2 }
 0x1fe   : > { %v1639_v32 = vpop.f32.mrf.mxu0  ;;  %v1179_v52 = vadd.f32 %v1161_v21, %v1060_v5 }
 0x1ff   : > { %v1663_v8 = vadd.f32 %v1639_v32, %v1549_v42 }
 0x200   : > { %v5106_v40 = vld [vmem:[#allocation2 + $0x20] sm:$0xff] }
 0x201   : > { %v4128_v25 = vld [vmem:[#allocation2 + $0x1c] sm:$0xff]  ;;  %v1683_v45 = vadd.f32 %v4961_v54, %v1663_v8  ;;  %2153 = vmatmul.bf16.gmra.mxu2 %v5106_v40  ;;  %v2191_v23 = vrot.slane %v5106_v40, 1  ;;  %v1958_v30 = vshll.u32 %v5106_v40, 16  ;;  %2759 = vmatpush.bf16.msrb.mxu3 %v4122_v22  ;;  %v1962_v7 = vshrl.u32 %v5106_v40, 16  ;;  %v1535_v46 = vpop.f32.mrf.mxu3 }
 0x202   : > { %2937 = vmatmul.bf16.gmra.mxu0 %v4128_v25  ;;  %v1327_v25 = vadd.f32 %v1308_v20, %v1178_v16  ;;  %v2503_v40 = vshrl.u32 %v5167_v62, 16  ;;  %v1793_v16 = vpop.permute.xlu2 %1792 }
 0x203   : > { %v1699_v61 = vmax.f32 %v1683_v45, 0.0  ;;  %v2192_v38 = vsel %vm598_vm2, %v2189_v18, %v2191_v23  ;;  %v5121_v60 = vrot.slane %v1958_v30, 1 }
 0x204   : > { %2274 = vmatmul.bf16.gmra.mxu3 %v2192_v38 }
 0x205   : > { %v1811_v36 = vmul.f32 %v1778_v39, %v1699_v61  ;;  %v1961_v26 = vsel %vm374_vm3, %v1956_v58, %v5121_v60  ;;  %2760 = vmatpush.bf16.msrb.mxu3 %v4121_v9  ;;  %v1964_v45 = vor.u32 %v1962_v7, %v5121_v60  ;;  %v2514_v61 = vshll.u32 %v5155_v49, 16  ;;  %v1310_v60 = vpop.f32.mrf.mxu2 }
 0x206   : > { %v1642_v6 = vpop.f32.mrf.mxu0  ;;  %2055 = vmatmul.bf16.gmra.mxu1 %v1961_v26  ;;  %v1552_v58 = vadd.f32 %v1533_v31, %v1327_v25  ;;  %v4159_v26 = vld [vmem:[%s5425_s4 + $0x230] sm:$0xff]  ;;  %v1328_v24 = vadd.f32 %v1310_v60, %v1179_v52  ;;  %v2365_v52 = vrot.slane %v5155_v49, 2  ;;  %v4157_v60 = vld [vmem:[%s5425_s4 + $0x220] sm:$0xff] }
 0x207   : > { %v4193_v18 = vpack.c.bf16 %v1811_v36, %v1810_v41  ;;  %v1664_v11 = vadd.f32 %v1642_v6, %v1550_v34  ;;  %v2513_v41 = vrot.slane %v2511_v4, 2  ;;  %v2516_v36 = vrot.slane %v2514_v61, 3  ;;  %v4152_v6 = vld [vmem:[%s5425_s4 + $0x1f8] sm:$0xff]  ;;  %3277 = vmatpush.bf16.msra.mxu2 %v4159_v26 }
 0x208   : > { %v2505_v34 = vrot.slane %v2503_v40, 2  ;;  %3138 = vmatpush.bf16.msra.mxu1 %v4152_v6  ;;  %v1553_v9 = vadd.f32 %v1535_v46, %v1328_v24  ;;  %v2690_v4 = vrot.slane %v5155_v49, 3 }
 0x209   : > { %4216 = vst [vmem:[#allocation2 + $0x28] sm:$0xff] %v4193_v18   ;;  %v1684_v53 = vadd.f32 %v4961_v54, %v1664_v11  ;;  %2761 = vmatpush.bf16.msrb.mxu3 %v4120_v19  ;;  %v2517_v11 = vor.u32 %v2516_v36, %v2513_v41 }
 0x20b   : > { %v1700_v15 = vmax.f32 %v1684_v53, 0.0 }
 0x20c   : > { %3139 = vmatpush.bf16.msra.mxu1 %v4151_v47 }
 0x20d   : > { %2762 = vmatpush.bf16.msrb.mxu3 %v4119_v17  ;;  %v1812_v30 = vmul.f32 %v1783_v51, %v1700_v15  ;;  %v4158_v51 = vld [vmem:[%s5425_s4 + $0x228] sm:$0xff] }
 0x20e   : > { %v1644_v0 = vpop.f32.mrf.mxu0  ;;  %3278 = vmatpush.bf16.msra.mxu2 %v4158_v51 }
 0x20f   : > { %v1665_v55 = vadd.f32 %v1644_v0, %v1551_v10  ;;  %v5190_v10 = vld [vmem:[#allocation2 + $0x14] sm:$0xff] }
 0x210   : > { %v5152_v13 = vld [vmem:[#allocation2 + $0x28] sm:$0xff]  ;;  %v2523_v15 = vshll.u32 %v5190_v10, 16  ;;  %v2692_v46 = vrot.slane %v5190_v10, 3  ;;  %v2367_v6 = vrot.slane %v5190_v10, 2 }
 0x211   : > { %v4129_v37 = vld [vmem:[#allocation2 + $0x24] sm:$0xff]  ;;  %v1685_v42 = vadd.f32 %v4961_v54, %v1665_v55  ;;  %2158 = vmatmul.bf16.gmra.mxu2 %v5152_v13  ;;  %v2193_v32 = vrot.slane %v5152_v13, 1  ;;  %v1966_v1 = vshll.u32 %v5152_v13, 16  ;;  %2763 = vmatpush.bf16.msrb.mxu3 %v4118_v63  ;;  %v1970_v31 = vshrl.u32 %v5152_v13, 16 }
 0x212   : > { %2942 = vmatmul.bf16.gmra.mxu0 %v4129_v37  ;;  %v2520_v37 = vshrl.u32 %v5190_v10, 16  ;;  %v2525_v25 = vrot.slane %v2523_v15, 3  ;;  %v2669_v13 = vld [vmem:[#allocation2 + $0x4] sm:$0x8]  ;;  %3279 = vmatpush.bf16.msra.mxu2 %v4157_v60  ;;  %v4155_v10 = vld [vmem:[%s5425_s4 + $0x210] sm:$0xff] }
 0x213   : > { %v1701_v8 = vmax.f32 %v1685_v42, 0.0  ;;  %v2194_v33 = vsel %vm598_vm2, %v2191_v23, %v2193_v32  ;;  %v1968_v57 = vrot.slane %v1966_v1, 1  ;;  %v2506_v23 = vshll.u32 %v5167_v62, 16 }
 0x214   : > { %2279 = vmatmul.bf16.gmra.mxu3 %v2194_v33  ;;  %v2522_v63 = vrot.slane %v2520_v37, 2  ;;  %v2687_v33 = vunpack.c.l.b16 %v2669_v13 }
 0x215   : > { %v1813_v27 = vmul.f32 %v1788_v59, %v1701_v8  ;;  %v1969_v38 = vsel %vm374_vm3, %v1964_v45, %v1968_v57  ;;  %v2508_v18 = vrot.slane %v2506_v23, 3  ;;  %v1972_v12 = vor.u32 %v1970_v31, %v1968_v57  ;;  %v4150_v59 = vld [vmem:[%s5425_s4 + $0x1e8] sm:$0xff] }
 0x216   : > { %v1647_v39 = vpop.f32.mrf.mxu0  ;;  %2060 = vmatmul.bf16.gmra.mxu1 %v1969_v38 }
 0x217   : > { %v4198_v22 = vpack.c.bf16 %v1813_v27, %v1812_v30  ;;  %v1666_v56 = vadd.f32 %v1647_v39, %v1552_v58  ;;  %v2509_v19 = vor.u32 %v2508_v18, %v2505_v34  ;;  %3140 = vmatpush.bf16.msra.mxu1 %v4150_v59  ;;  %v2688_v30 = vpack.c.b16 %v2345_v35, %v2687_v33  ;;  %v5213_v27 = vld [vmem:[#allocation2 + $0x1c] sm:$0xff] }
 0x218   : > { %v2529_v39 = vshrl.u32 %v5213_v27, 16  ;;  %v2532_v38 = vshll.u32 %v5213_v27, 16  ;;  %v4156_v34 = vld [vmem:[%s5425_s4 + $0x218] sm:$0xff]  ;;  %v2693_v18 = vsel %vm1066_vm5, %v2690_v4, %v2692_v46  ;;  %v2369_v47 = vrot.slane %v5213_v27, 2 }
 0x219   : > { %4217 = vst [vmem:[#allocation2 + $0x30] sm:$0xff] %v4198_v22   ;;  %v1686_v44 = vadd.f32 %v4961_v54, %v1666_v56  ;;  %v2518_v20 = vsel %vm888_vm6, %v2509_v19, %v2517_v11  ;;  %v2689_v61 = vrot.slane %v2688_v30, 3  ;;  %v2364_v22 = vrot.slane %v5167_v62, 2  ;;  %v4149_v56 = vld [vmem:[%s5425_s4 + $0x1e0] sm:$0xff]  ;;  %3280 = vmatpush.bf16.msra.mxu2 %v4156_v34 }
 0x21a   : > { %v2531_v40 = vrot.slane %v2529_v39, 2  ;;  %v2534_v23 = vrot.slane %v2532_v38, 3  ;;  %v5229_v62 = vld [vmem:[#allocation2 + $0x24] sm:$0xff]  ;;  %v2370_v15 = vsel %vm769_vm4, %v2367_v6, %v2369_v47 }
 0x21b   : > { %v1702_v53 = vmax.f32 %v1686_v44, 0.0  ;;  %v2691_v58 = vsel %vm1066_vm5, %v2689_v61, %v2690_v4  ;;  %v2366_v35 = vsel %vm769_vm4, %v2364_v22, %v2365_v52  ;;  %3141 = vmatpush.bf16.msra.mxu1 %v4149_v56  ;;  %v2538_v26 = vshrl.u32 %v5229_v62, 16  ;;  %v4145_v56 = vld [vmem:[%s5425_s4 + $0x1c0] sm:$0xff] }
 0x21c   : > { %v2535_v49 = vor.u32 %v2534_v23, %v2531_v40  ;;  %v2541_v24 = vshll.u32 %v5229_v62, 16  ;;  %v2696_v33 = vrot.slane %v5229_v62, 3 }
 0x21d   : > { %v2540_v44 = vrot.slane %v2538_v26, 2  ;;  %3281 = vmatpush.bf16.msra.mxu2 %v4155_v10  ;;  %v2971_v26 = vld [vmem:[#allocation2 + $0x10] sm:$0xf] }
 0x21e   : > { %v1649_v28 = vpop.f32.mrf.mxu0 }
 0x21f   : > { %v1667_v14 = vadd.f32 %v1649_v28, %v1553_v9  ;;  %v2368_v9 = vsel %vm769_vm4, %v2365_v52, %v2367_v6  ;;  %v4148_v28 = vld [vmem:[%s5425_s4 + $0x1d8] sm:$0xff] }
 0x220   : > { %v4130_v29 = vld [vmem:[#allocation2 + $0x2c] sm:$0xff]  ;;  %3142 = vmatpush.bf16.msra.mxu1 %v4148_v28 }
 0x221   : > { %v1876_v43 = vld [vmem:[#allocation2 + $0x30] sm:$0x1]  ;;  %v1687_v3 = vadd.f32 %v4961_v54, %v1667_v14  ;;  %2626 = vmatmul.bf16.vlgmr.msrb.gmra.mxu2 %v2518_v20  ;;  %v1814_v54 = vmul.f32 %v1793_v16, %v1702_v53  ;;  %v2694_v53 = vrot.slane %v5213_v27, 3  ;;  %v2371_v27 = vrot.slane %v5229_v62, 2 }
 0x222   : > { %v1918_v0 = vunpack.c.l.b16 %v1876_v43  ;;  %2947 = vmatmul.bf16.gmra.mxu0 %v4130_v29  ;;  %v5244_v43 = vld [vmem:[#allocation2 + $0x2c] sm:$0xff] }
 0x223   : > { %v1703_v55 = vmax.f32 %v1687_v3, 0.0  ;;  %v2695_v16 = vsel %vm1066_vm5, %v2692_v46, %v2694_v53  ;;  %v2697_v52 = vsel %vm1066_vm5, %v2694_v53, %v2696_v33  ;;  %v2698_v46 = vrot.slane %v5244_v43, 3  ;;  %v2314_v53 = vld [vmem:[#allocation2 + $0x34] sm:$0x3] }
 0x224   : > { %v1925_v17 = vpack.c.b16 %v1918_v0, %v1918_v0 }
 0x225   : > { %v1815_v42 = vmul.f32 %v1798_v48, %v1703_v55  ;;  %v2547_v55 = vshrl.u32 %v5244_v43, 16  ;;  %v4147_v48 = vld [vmem:[%s5425_s4 + $0x1d0] sm:$0xff] }
 0x226   : > { %v2195_v2 = vrot.slane %v1925_v17, 1  ;;  %v1974_v5 = vshll.u32 %v1925_v17, 16  ;;  %v2550_v17 = vshll.u32 %v5244_v43, 16  ;;  %3143 = vmatpush.bf16.msra.mxu1 %v4147_v48 }
 0x227   : > { %v4203_v7 = vpack.c.bf16 %v1815_v42, %v1814_v54  ;;  %v2549_v54 = vrot.slane %v2547_v55, 2  ;;  %v2356_v55 = vunpack.c.l.b16 %v2314_v53 }
 0x228   : > { %v2196_v1 = vsel %vm598_vm2, %v2193_v32, %v2195_v2  ;;  %v1976_v21 = vrot.slane %v1974_v5, 1  ;;  %v2526_v32 = vor.u32 %v2525_v25, %v2522_v63  ;;  %v2552_v42 = vrot.slane %v2550_v17, 3  ;;  %v2482_v2 = vld [vmem:[#allocation2 + $0x34] sm:$0x7]  ;;  %v4154_v5 = vld [vmem:[%s5425_s4 + $0x208] sm:$0xff]  ;;  %v4153_v63 = vld [vmem:[%s5425_s4 + $0x200] sm:$0xff] }
 0x229   : > { %2284 = vmatmul.bf16.gmra.mxu3 %v2196_v1  ;;  %4218 = vst [vmem:[#allocation2 + $0x38] sm:$0xff] %v4203_v7   ;;  %3282 = vmatpush.bf16.msra.mxu2 %v4154_v5 }
 0x22a   : > { %v1977_v8 = vsel %vm374_vm3, %v1972_v12, %v1976_v21  ;;  %v2527_v57 = vsel %vm888_vm6, %v2517_v11, %v2526_v32  ;;  %v2536_v41 = vsel %vm888_vm6, %v2526_v32, %v2535_v49  ;;  %v2543_v11 = vrot.slane %v2541_v24, 3  ;;  %v4146_v32 = vld [vmem:[%s5425_s4 + $0x1c8] sm:$0xff] }
 0x22b   : > { %2065 = vmatmul.bf16.gmra.mxu1 %v1977_v8  ;;  %v2553_v21 = vor.u32 %v2552_v42, %v2549_v54  ;;  %v2500_v8 = vunpack.c.l.b16 %v2482_v2 }
 0x22c   : > { %v2544_v19 = vor.u32 %v2543_v11, %v2540_v44  ;;  %3144 = vmatpush.bf16.msra.mxu1 %v4146_v32  ;;  %v2699_v44 = vsel %vm1066_vm5, %v2696_v33, %v2698_v46  ;;  %v3013_v11 = vunpack.c.l.b16 %v2971_v26 }
 0x22d   : > { %3283 = vmatpush.bf16.msra.mxu2 %v4153_v63  ;;  %v5269_v13 = vpack.c.b16 %v2500_v8, %v2500_v8  ;;  %v4141_v63 = vld [vmem:[#allocation2 + $0x1c] sm:$0xff] }
 0x22e   : > { %v2545_v29 = vsel %vm888_vm6, %v2535_v49, %v2544_v19  ;;  %v2554_v59 = vsel %vm888_vm6, %v2544_v19, %v2553_v21 }
 0x22f   : > { %v2556_v4 = vshrl.u32 %v5269_v13, 16  ;;  %v2559_v61 = vshll.u32 %v5269_v13, 16  ;;  %v2700_v54 = vrot.slane %v5269_v13, 3 }
 0x230   : > { %v4131_v45 = vld [vmem:[#allocation2 + $0x34] sm:$0xff]  ;;  %3145 = vmatpush.bf16.msra.mxu1 %v4145_v56  ;;  %v4142_v56 = vld [vmem:[#allocation2 + $0x24] sm:$0xff] }
 0x231   : > { %2631 = vmatmul.bf16.gmra.mxu2 %v2527_v57  ;;  %v2558_v22 = vrot.slane %v2556_v4, 2 }
 0x232   : > { %2952 = vmatmul.bf16.gmra.mxu0 %v4131_v45 }
 0x239   : > { %2764 = vmatmul.bf16.vlgmr.msrb.gmra.mxu3 %v2691_v58  ;;  %v2372_v58 = vsel %vm769_vm4, %v2369_v47, %v2371_v27 }
 0x23b   : > { %2439 = vmatmul.bf16.vlgmr.msrb.gmra.mxu1 %v2366_v35  ;;  %v2561_v35 = vrot.slane %v2559_v61, 3 }
 0x23c   : > { %v2134_v36 = vpop.f32.mrf.mxu2 }
 0x23d   : > { %v2562_v49 = vor.u32 %v2561_v35, %v2558_v22 }
 0x241   : > { %2636 = vmatmul.bf16.gmra.mxu2 %v2536_v41 }
 0x244   : > { %v2136_v14 = vpop.f32.mrf.mxu2 }
 0x249   : > { %2769 = vmatmul.bf16.gmra.mxu3 %v2693_v18  ;;  %v2373_v18 = vrot.slane %v5244_v43, 2 }
 0x24b   : > { %2444 = vmatmul.bf16.gmra.mxu1 %v2368_v9  ;;  %v3189_v9 = vld [vmem:[#allocation2 + $0xc] sm:$0xe]  ;;  %v2374_v19 = vsel %vm769_vm4, %v2371_v27, %v2373_v18 }
 0x24c   : > { %v3207_v10 = vunpack.c.l.b16 %v3189_v9 }
 0x251   : > { %2641 = vmatmul.bf16.gmra.mxu2 %v2545_v29  ;;  %v5294_v29 = vld [vmem:[#allocation2 + $0x14] sm:$0xff] }
 0x252   : > { %v3210_v43 = vrot.slane %v5294_v29, 1  ;;  %v3040_v61 = vshll.u32 %v5294_v29, 16 }
 0x253   : > { %v2041_v3 = vpop.f32.mrf.mxu1 }
 0x254   : > { %v2135_v20 = vadd.f32 %v2134_v36, %v2041_v3  ;;  %v2139_v0 = vpop.f32.mrf.mxu2  ;;  %v2563_v36 = vsel %vm888_vm6, %v2553_v21, %v2562_v49  ;;  %v3208_v3 = vpack.c.b16 %v3013_v11, %v3207_v10  ;;  %v3042_v35 = vrot.slane %v3040_v61, 1 }
 0x256   : > { %v3209_v17 = vrot.slane %v3208_v3, 1  ;;  %v4143_v3 = vld [vmem:[#allocation2 + $0x2c] sm:$0xff] }
 0x257   : > { %v2260_v31 = vpop.f32.mrf.mxu3 }
 0x258   : > { %v5257_v37 = vadd.f32 %v2260_v31, %v2135_v20  ;;  %v3211_v31 = vsel %vm598_vm2, %v3209_v17, %v3210_v43 }
 0x259   : > { %2774 = vmatmul.bf16.gmra.mxu3 %v2695_v16 }
 0x25b   : > { %2449 = vmatmul.bf16.gmra.mxu1 %v2370_v15  ;;  %v2043_v7 = vpop.f32.mrf.mxu1  ;;  %v2363_v15 = vpack.c.b16 %v2356_v55, %v2356_v55 }
 0x25c   : > { %v2137_v1 = vadd.f32 %v2136_v14, %v2043_v7  ;;  %v2141_v12 = vpop.f32.mrf.mxu2 }
 0x25d   : > { %v2375_v7 = vrot.slane %v2363_v15, 2 }
 0x25f   : > { %v2262_v25 = vpop.f32.mrf.mxu3  ;;  %v2376_v8 = vsel %vm769_vm4, %v2373_v18, %v2375_v7  ;;  %v3048_v18 = vshll.u32 %v4141_v63, 16 }
 0x260   : > { %v5266_v51 = vadd.f32 %v2262_v25, %v2137_v1  ;;  %v2701_v1 = vsel %vm1066_vm5, %v2698_v46, %v2700_v54  ;;  %v3012_v25 = vunpack.c.h.b16 %v5142_v50 }
 0x261   : > { %2646 = vmatmul.bf16.gmra.mxu2 %v2554_v59 }
 0x262   : > { %v3025_v59 = vpack.c.b16 %v3013_v11, %v3012_v25  ;;  %v3050_v11 = vrot.slane %v3048_v18, 1 }
 0x263   : > { %v2046_v45 = vpop.f32.mrf.mxu1 }
 0x264   : > { %v2140_v57 = vadd.f32 %v2139_v0, %v2046_v45  ;;  %v2144_v30 = vpop.f32.mrf.mxu2  ;;  %v3212_v45 = vrot.slane %v4141_v63, 1  ;;  %v3033_v50 = vshrl.u32 %v3025_v59, 16 }
 0x266   : > { %v3213_v4 = vsel %vm598_vm2, %v3210_v43, %v3212_v45  ;;  %v3216_v43 = vrot.slane %v4143_v3, 1 }
 0x267   : > { %v2265_v39 = vpop.f32.mrf.mxu3 }
 0x268   : > { %v5279_v38 = vadd.f32 %v2265_v39, %v2140_v57  ;;  %v3035_v57 = vshll.u32 %v3025_v59, 16 }
 0x269   : > { %2779 = vmatmul.bf16.gmra.mxu3 %v2697_v52 }
 0x26a   : > { %v3037_v52 = vrot.slane %v3035_v57, 1  ;;  %v3064_v57 = vshll.u32 %v4143_v3, 16 }
 0x26b   : > { %2454 = vmatmul.bf16.gmra.mxu1 %v2372_v58  ;;  %v2048_v40 = vpop.f32.mrf.mxu1 }
 0x26c   : > { %v2142_v23 = vadd.f32 %v2141_v12, %v2048_v40  ;;  %v2146_v60 = vpop.f32.mrf.mxu2  ;;  %v3038_v40 = vor.u32 %v3037_v52, %v3033_v50  ;;  %v3066_v61 = vrot.slane %v3064_v57, 1 }
 0x26e   : > { %v3043_v49 = vsel %vm374_vm3, %v3038_v40, %v3042_v35 }
 0x26f   : > { %v2267_v41 = vpop.f32.mrf.mxu3 }
 0x270   : > { %v5285_v62 = vadd.f32 %v2267_v41, %v2142_v23 }
 0x271   : > { %2651 = vmatmul.bf16.gmra.mxu2 %v2563_v36 }
 0x273   : > { %v2051_v6 = vpop.f32.mrf.mxu1 }
 0x274   : > { %v2145_v24 = vadd.f32 %v2144_v30, %v2051_v6  ;;  %v2149_v34 = vpop.f32.mrf.mxu2  ;;  %v3214_v6 = vrot.slane %v4142_v56, 1 }
 0x277   : > { %v2270_v28 = vpop.f32.mrf.mxu3 }
 0x278   : > { %v5291_v14 = vadd.f32 %v2270_v28, %v2145_v24 }
 0x279   : > { %2784 = vmatmul.bf16.gmra.mxu3 %v2699_v44  ;;  %v3044_v44 = vshrl.u32 %v5294_v29, 16 }
 0x27b   : > { %2459 = vmatmul.bf16.gmra.mxu1 %v2374_v19  ;;  %v2053_v20 = vpop.f32.mrf.mxu1  ;;  %v3046_v19 = vor.u32 %v3044_v44, %v3042_v35 }
 0x27c   : > { %v2147_v0 = vadd.f32 %v2146_v60, %v2053_v20  ;;  %v2151_v47 = vpop.f32.mrf.mxu2 }
 0x27d   : > { %v3051_v53 = vsel %vm374_vm3, %v3046_v19, %v3050_v11 }
 0x27f   : > { %v2272_v48 = vpop.f32.mrf.mxu3 }
 0x280   : > { %v5297_v16 = vadd.f32 %v2272_v48, %v2147_v0  ;;  %v3217_v48 = vsel %vm598_vm2, %v3214_v6, %v3216_v43 }
 0x281   : > { %3284 = vmatmul.bf16.vlgmr.msra.gmra.mxu2 %v3211_v31  ;;  %v3056_v31 = vshll.u32 %v4142_v56, 16 }
 0x283   : > { %v2056_v42 = vpop.f32.mrf.mxu1 }
 0x284   : > { %v2150_v2 = vadd.f32 %v2149_v34, %v2056_v42  ;;  %v2154_v5 = vpop.f32.mrf.mxu2  ;;  %v3215_v34 = vsel %vm598_vm2, %v3212_v45, %v3214_v6  ;;  %v3052_v42 = vshrl.u32 %v4141_v63, 16 }
 0x286   : > { %v3054_v7 = vor.u32 %v3052_v42, %v3050_v11 }
 0x287   : > { %v2275_v12 = vpop.f32.mrf.mxu3 }
 0x288   : > { %v5302_v21 = vadd.f32 %v2275_v12, %v2150_v2  ;;  %v3058_v2 = vrot.slane %v3056_v31, 1 }
 0x289   : > { %2789 = vmatmul.bf16.gmra.mxu3 %v2701_v1 }
 0x28a   : > { %v3059_v12 = vsel %vm374_vm3, %v3054_v7, %v3058_v2 }
 0x28b   : > { %2464 = vmatmul.bf16.gmra.mxu1 %v2376_v8  ;;  %v2058_v32 = vpop.f32.mrf.mxu1  ;;  %v4144_v8 = vld [vmem:[#allocation2 + $0x34] sm:$0xff] }
 0x28c   : > { %v2152_v33 = vadd.f32 %v2151_v47, %v2058_v32  ;;  %v2156_v13 = vpop.f32.mrf.mxu2  ;;  %v3218_v32 = vrot.slane %v4144_v8, 1 }
 0x28e   : > { %v3219_v45 = vsel %vm598_vm2, %v3216_v43, %v3218_v32 }
 0x28f   : > { %v2277_v30 = vpop.f32.mrf.mxu3 }
 0x290   : > { %v5306_v27 = vadd.f32 %v2277_v30, %v2152_v33  ;;  %v2982_v30 = vld [vmem:[#allocation2 + $0x3c] sm:$0x1] }
 0x291   : > { %3289 = vmatmul.bf16.gmra.mxu2 %v3213_v4  ;;  %v3024_v52 = vunpack.c.l.b16 %v2982_v30 }
 0x293   : > { %v2061_v39 = vpop.f32.mrf.mxu1  ;;  %v3031_v35 = vpack.c.b16 %v3024_v52, %v3024_v52 }
 0x294   : > { %v2155_v58 = vadd.f32 %v2154_v5, %v2061_v39  ;;  %v2159_v22 = vpop.f32.mrf.mxu2 }
 0x297   : > { %v2280_v23 = vpop.f32.mrf.mxu3 }
 0x298   : > { %v5310_v60 = vadd.f32 %v2280_v23, %v2155_v58  ;;  %v3220_v23 = vrot.slane %v3031_v35, 1 }
 0x29b   : > { %3146 = vmatmul.bf16.vlgmr.msra.gmra.mxu1 %v3043_v49  ;;  %v2063_v41 = vpop.f32.mrf.mxu1 }
 0x29c   : > { %v2157_v36 = vadd.f32 %v2156_v13, %v2063_v41  ;;  %v2161_v46 = vpop.f32.mrf.mxu2 }
 0x29f   : > { %v2282_v26 = vpop.f32.mrf.mxu3 }
 0x2a0   : > { %v5313_v24 = vadd.f32 %v2282_v26, %v2157_v36  ;;  %v3221_v36 = vsel %vm598_vm2, %v3218_v32, %v3220_v23  ;;  %v3068_v26 = vshrl.u32 %v4143_v3, 16 }
 0x2a1   : > { %3294 = vmatmul.bf16.gmra.mxu2 %v3215_v34 }
 0x2a2   : > { %v3070_v18 = vor.u32 %v3068_v26, %v3066_v61 }
 0x2a4   : > { %v2627_v9 = vpop.f32.mrf.mxu2 }
 0x2a8   : > { %v2066_v28 = vpop.f32.mrf.mxu1 }
 0x2a9   : > { %v2160_v10 = vadd.f32 %v2159_v22, %v2066_v28 }
 0x2ab   : > { %3151 = vmatmul.bf16.gmra.mxu1 %v3051_v53 }
 0x2ac   : > { %v2285_v20 = vpop.f32.mrf.mxu3  ;;  %v2629_v47 = vpop.f32.mrf.mxu2 }
 0x2ad   : > { %v5318_v0 = vadd.f32 %v2285_v20, %v2160_v10  ;;  %v3080_v10 = vshll.u32 %v3031_v35, 16  ;;  %v3076_v20 = vshrl.u32 %v4144_v8, 16 }
 0x2af   : > { %v3082_v43 = vrot.slane %v3080_v10, 1 }
 0x2b0   : > { %v2068_v55 = vpop.f32.mrf.mxu1 }
 0x2b1   : > { %v2162_v17 = vadd.f32 %v2161_v46, %v2068_v55  ;;  %3299 = vmatmul.bf16.gmra.mxu2 %v3217_v48 }
 0x2b4   : > { %v2287_v29 = vpop.f32.mrf.mxu3  ;;  %v2632_v54 = vpop.f32.mrf.mxu2 }
 0x2b5   : > { %v5321_v15 = vadd.f32 %v2287_v29, %v2162_v17 }
 0x2b8   : > { %v2440_v5 = vpop.f32.mrf.mxu1 }
 0x2b9   : > { %v2470_v1 = vadd.f32 %v2440_v5, %v5257_v37  ;;  %v3060_v37 = vshrl.u32 %v4142_v56, 16  ;;  %v3072_v56 = vshll.u32 %v4144_v8, 16 }
 0x2bb   : > { %3156 = vmatmul.bf16.gmra.mxu1 %v3059_v12  ;;  %v5325_v25 = vadd.f32 %v2627_v9, %v2470_v1  ;;  %v3062_v58 = vor.u32 %v3060_v37, %v3058_v2 }
 0x2bc   : > { %v2634_v59 = vpop.f32.mrf.mxu2  ;;  %v2765_v5 = vpop.f32.mrf.mxu3 }
 0x2bd   : > { %v3067_v50 = vsel %vm374_vm3, %v3062_v58, %v3066_v61  ;;  %v2795_v52 = vadd.f32 %v2765_v5, %v5325_v25 }
 0x2c0   : > { %v2442_v33 = vpop.f32.mrf.mxu1 }
 0x2c1   : > { %v2471_v13 = vadd.f32 %v2442_v33, %v5266_v51  ;;  %3304 = vmatmul.bf16.gmra.mxu2 %v3219_v45 }
 0x2c3   : > { %v5329_v63 = vadd.f32 %v2629_v47, %v2471_v13 }
 0x2c4   : > { %v2637_v4 = vpop.f32.mrf.mxu2  ;;  %v2767_v32 = vpop.f32.mrf.mxu3 }
 0x2c5   : > { %v2796_v23 = vadd.f32 %v2767_v32, %v5329_v63 }
 0x2c8   : > { %v2445_v39 = vpop.f32.mrf.mxu1 }
 0x2c9   : > { %v2472_v22 = vadd.f32 %v2445_v39, %v5279_v38  ;;  %v3074_v38 = vrot.slane %v3072_v56, 1 }
 0x2cb   : > { %3161 = vmatmul.bf16.gmra.mxu1 %v3067_v50  ;;  %v5333_v51 = vadd.f32 %v2632_v54, %v2472_v22  ;;  %v3075_v44 = vsel %vm374_vm3, %v3070_v18, %v3074_v38  ;;  %v3078_v3 = vor.u32 %v3076_v20, %v3074_v38 }
 0x2cc   : > { %v2639_v40 = vpop.f32.mrf.mxu2 }
 0x2d0   : > { %v2447_v49 = vpop.f32.mrf.mxu1 }
 0x2d1   : > { %v2473_v41 = vadd.f32 %v2447_v49, %v5285_v62  ;;  %3309 = vmatmul.bf16.gmra.mxu2 %v3221_v36 }
 0x2d3   : > { %v5337_v46 = vadd.f32 %v2634_v59, %v2473_v41 }
 0x2d4   : > { %v2642_v6 = vpop.f32.mrf.mxu2 }
 0x2d8   : > { %v2450_v34 = vpop.f32.mrf.mxu1 }
 0x2d9   : > { %v2474_v9 = vadd.f32 %v2450_v34, %v5291_v14  ;;  %v3083_v14 = vsel %vm374_vm3, %v3078_v3, %v3082_v43 }
 0x2db   : > { %3166 = vmatmul.bf16.gmra.mxu1 %v3075_v44  ;;  %v5341_v11 = vadd.f32 %v2637_v4, %v2474_v9  ;;  %v2770_v4 = vpop.f32.mrf.mxu3 }
 0x2dc   : > { %v2644_v28 = vpop.f32.mrf.mxu2  ;;  %v2797_v63 = vadd.f32 %v2770_v4, %v5333_v51 }
 0x2e0   : > { %v2452_v62 = vpop.f32.mrf.mxu1 }
 0x2e1   : > { %v2475_v19 = vadd.f32 %v2452_v62, %v5297_v16 }
 0x2e3   : > { %v5344_v53 = vadd.f32 %v2639_v40, %v2475_v19  ;;  %v2772_v58 = vpop.f32.mrf.mxu3 }
 0x2e4   : > { %v2647_v47 = vpop.f32.mrf.mxu2  ;;  %v2798_v10 = vadd.f32 %v2772_v58, %v5337_v46 }
 0x2e8   : > { %v2455_v55 = vpop.f32.mrf.mxu1 }
 0x2e9   : > { %v2476_v17 = vadd.f32 %v2455_v55, %v5302_v21  ;;  %v2928_v21 = vpop.f32.mrf.mxu0 }
 0x2ea   : > { %v2958_v22 = vadd.f32 %v2928_v21, %v2795_v52 }
 0x2eb   : > { %3171 = vmatmul.bf16.gmra.mxu1 %v3083_v14  ;;  %v5348_v48 = vadd.f32 %v2642_v6, %v2476_v17  ;;  %v2775_v6 = vpop.f32.mrf.mxu3 }
 0x2ec   : > { %v2649_v31 = vpop.f32.mrf.mxu2 }
 0x2f0   : > { %v2457_v29 = vpop.f32.mrf.mxu1 }
 0x2f1   : > { %v2477_v54 = vadd.f32 %v2457_v29, %v5306_v27  ;;  %v2930_v57 = vpop.f32.mrf.mxu0  ;;  %v2799_v29 = vadd.f32 %v2775_v6, %v5341_v11 }
 0x2f2   : > { %v2959_v36 = vadd.f32 %v2930_v57, %v2796_v23 }
 0x2f3   : > { %v5351_v16 = vadd.f32 %v2644_v28, %v2477_v54  ;;  %v2777_v20 = vpop.f32.mrf.mxu3 }
 0x2f4   : > { %v2652_v42 = vpop.f32.mrf.mxu2 }
 0x2f8   : > { %v2460_v2 = vpop.f32.mrf.mxu1 }
 0x2f9   : > { %v2478_v7 = vadd.f32 %v2460_v2, %v5310_v60 }
 0x2fb   : > { %v5354_v1 = vadd.f32 %v2647_v47, %v2478_v7 }
 0x2fc   : > { %v2654_v12 = vpop.f32.mrf.mxu2 }
 0x300   : > { %v2462_v8 = vpop.f32.mrf.mxu1 }
 0x301   : > { %v2479_v59 = vadd.f32 %v2462_v8, %v5313_v24  ;;  %v2933_v24 = vpop.f32.mrf.mxu0  ;;  %v2800_v8 = vadd.f32 %v2777_v20, %v5344_v53 }
 0x302   : > { %v2960_v44 = vadd.f32 %v2933_v24, %v2797_v63 }
 0x303   : > { %v5357_v33 = vadd.f32 %v2649_v31, %v2479_v59 }
 0x304   : > { %v3285_v13 = vpop.f32.mrf.mxu2 }
 0x308   : > { %v2465_v45 = vpop.f32.mrf.mxu1 }
 0x309   : > { %v2480_v27 = vadd.f32 %v2465_v45, %v5318_v0  ;;  %v5369_v0 = vld [vmem:[%s5426_s5] ss:$0 sm:$0xff]  ;;  %v2935_v25 = vpop.f32.mrf.mxu0 }
 0x30a   : > { %v2961_v51 = vadd.f32 %v2935_v25, %v2798_v10 }
 0x30b   : > { %v5360_v30 = vadd.f32 %v2652_v42, %v2480_v27  ;;  %v2780_v42 = vpop.f32.mrf.mxu3 }
 0x30c   : > { %v3287_v60 = vpop.f32.mrf.mxu2 }
 0x310   : > { %v2467_v37 = vpop.f32.mrf.mxu1 }
 0x311   : > { %v2481_v61 = vadd.f32 %v2467_v37, %v5321_v15  ;;  %v2938_v28 = vpop.f32.mrf.mxu0  ;;  %v2801_v37 = vadd.f32 %v2780_v42, %v5348_v48 }
 0x312   : > { %v2962_v7 = vadd.f32 %v2938_v28, %v2799_v29 }
 0x313   : > { %v5364_v39 = vadd.f32 %v2654_v12, %v2481_v61  ;;  %v2782_v45 = vpop.f32.mrf.mxu3 }
 0x314   : > { %v3290_v50 = vpop.f32.mrf.mxu2  ;;  %v2802_v23 = vadd.f32 %v2782_v45, %v5351_v16 }
 0x318   : > { %v3147_v35 = vpop.f32.mrf.mxu1 }
 0x319   : > { %v3177_v40 = vadd.f32 %v3147_v35, %v2958_v22  ;;  %v2940_v31 = vpop.f32.mrf.mxu0 }
 0x31a   : > { %v2963_v27 = vadd.f32 %v2940_v31, %v2800_v8 }
 0x31b   : > { %v3315_v49 = vadd.f32 %v3285_v13, %v3177_v40 }
 0x31c   : > { %v3292_v38 = vpop.f32.mrf.mxu2 }
 0x31d   : > { %v3331_v15 = vadd.f32 %v5369_v0, %v3315_v49 }
 0x31f   : > { %v3343_v41 = vmax.f32 %v3331_v15, 0.0 }
 0x320   : > { %v3149_v56 = vpop.f32.mrf.mxu1 }
 0x321   : > { %3355 = vst [vmem:[%s5377_s30] sm:$0xff] %v3343_v41  ;;  %v3178_v26 = vadd.f32 %v3149_v56, %v2959_v36  ;;  %v2943_v32 = vpop.f32.mrf.mxu0 }
 0x322   : > { %v2964_v58 = vadd.f32 %v2943_v32, %v2801_v37 }
 0x323   : > { %v3316_v34 = vadd.f32 %v3287_v60, %v3178_v26 }
 0x324   : > { %v3295_v3 = vpop.f32.mrf.mxu2 }
 0x325   : > { %v3332_v18 = vadd.f32 %v5369_v0, %v3316_v34 }
 0x327   : > { %v3344_v9 = vmax.f32 %v3332_v18, 0.0 }
 0x328   : > { %v3152_v62 = vpop.f32.mrf.mxu1 }
 0x329   : > { %3356 = vst [vmem:[%s5377_s30 + $0x8] sm:$0xff] %v3344_v9  ;;  %v3179_v19 = vadd.f32 %v3152_v62, %v2960_v44  ;;  %v2945_v24 = vpop.f32.mrf.mxu0 }
 0x32a   : > { %v2965_v48 = vadd.f32 %v2945_v24, %v2802_v23 }
 0x32b   : > { %v3317_v47 = vadd.f32 %v3290_v50, %v3179_v19  ;;  %v2785_v50 = vpop.f32.mrf.mxu3 }
 0x32c   : > { %v3297_v46 = vpop.f32.mrf.mxu2  ;;  %v2803_v6 = vadd.f32 %v2785_v50, %v5354_v1 }
 0x32d   : > { %v3333_v43 = vadd.f32 %v5369_v0, %v3317_v47 }
 0x32f   : > { %v3345_v55 = vmax.f32 %v3333_v43, 0.0 }
 0x330   : > { %v3154_v17 = vpop.f32.mrf.mxu1 }
 0x331   : > { %3357 = vst [vmem:[%s5377_s30 + $0x10] sm:$0xff] %v3345_v55  ;;  %v3180_v14 = vadd.f32 %v3154_v17, %v2961_v51  ;;  %v2948_v41 = vpop.f32.mrf.mxu0 }
 0x332   : > { %v2966_v16 = vadd.f32 %v2948_v41, %v2803_v6 }
 0x333   : > { %v3318_v54 = vadd.f32 %v3292_v38, %v3180_v14  ;;  %v2787_v26 = vpop.f32.mrf.mxu3 }
 0x334   : > { %v3300_v57 = vpop.f32.mrf.mxu2  ;;  %v2804_v62 = vadd.f32 %v2787_v26, %v5357_v33 }
 0x335   : > { %v3334_v2 = vadd.f32 %v5369_v0, %v3318_v54 }
 0x337   : > { %v3346_v5 = vmax.f32 %v3334_v2, 0.0 }
 0x338   : > { %v3157_v12 = vpop.f32.mrf.mxu1 }
 0x339   : > { %3358 = vst [vmem:[%s5377_s30 + $0x18] sm:$0xff] %v3346_v5  ;;  %v3181_v21 = vadd.f32 %v3157_v12, %v2962_v7  ;;  %v2950_v28 = vpop.f32.mrf.mxu0 }
 0x33b   : > { %v3319_v59 = vadd.f32 %v3295_v3, %v3181_v21  ;;  %v2790_v10 = vpop.f32.mrf.mxu3  ;;  %v2967_v3 = vadd.f32 %v2950_v28, %v2804_v62 }
 0x33c   : > { %v3302_v40 = vpop.f32.mrf.mxu2  ;;  %v2805_v51 = vadd.f32 %v2790_v10, %v5360_v30 }
 0x33d   : > { %v3335_v13 = vadd.f32 %v5369_v0, %v3319_v59 }
 0x33f   : > { %v3347_v11 = vmax.f32 %v3335_v13, 0.0 }
 0x340   : > { %v3159_v4 = vpop.f32.mrf.mxu1 }
 0x341   : > { %3359 = vst [vmem:[%s5377_s30 + $0x20] sm:$0xff] %v3347_v11  ;;  %v3182_v60 = vadd.f32 %v3159_v4, %v2963_v27  ;;  %v2953_v14 = vpop.f32.mrf.mxu0 }
 0x342   : > { %v2968_v54 = vadd.f32 %v2953_v14, %v2805_v51 }
 0x343   : > { %v3320_v61 = vadd.f32 %v3297_v46, %v3182_v60  ;;  %v2792_v29 = vpop.f32.mrf.mxu3 }
 0x344   : > { %v3305_v63 = vpop.f32.mrf.mxu2  ;;  %v2806_v5 = vadd.f32 %v2792_v29, %v5364_v39 }
 0x345   : > { %v3336_v52 = vadd.f32 %v5369_v0, %v3320_v61 }
 0x347   : > { %v3348_v53 = vmax.f32 %v3336_v52, 0.0 }
 0x348   : > { %v3162_v22 = vpop.f32.mrf.mxu1 }
 0x349   : > { %3360 = vst [vmem:[%s5377_s30 + $0x28] sm:$0xff] %v3348_v53  ;;  %v3183_v35 = vadd.f32 %v3162_v22, %v2964_v58  ;;  %v2955_v21 = vpop.f32.mrf.mxu0 }
 0x34a   : > { %v2969_v8 = vadd.f32 %v2955_v21, %v2806_v5 }
 0x34b   : > { %v3321_v49 = vadd.f32 %v3300_v57, %v3183_v35 }
 0x34c   : > { %v3307_v1 = vpop.f32.mrf.mxu2 }
 0x34d   : > { %v3337_v15 = vadd.f32 %v5369_v0, %v3321_v49 }
 0x34f   : > { %v3349_v25 = vmax.f32 %v3337_v15, 0.0 }
 0x350   : > { %v3164_v36 = vpop.f32.mrf.mxu1 }
 0x351   : > { %3361 = vst [vmem:[%s5377_s30 + $0x30] sm:$0xff] %v3349_v25  ;;  %v3184_v56 = vadd.f32 %v3164_v36, %v2965_v48 }
 0x353   : > { %v3322_v38 = vadd.f32 %v3302_v40, %v3184_v56 }
 0x354   : > { %v3310_v42 = vpop.f32.mrf.mxu2 }
 0x355   : > { %v3338_v34 = vadd.f32 %v5369_v0, %v3322_v38 }
 0x357   : > { %v3350_v18 = vmax.f32 %v3338_v34, 0.0 }
 0x358   : > { %v3167_v9 = vpop.f32.mrf.mxu1 }
 0x359   : > { %3362 = vst [vmem:[%s5377_s30 + $0x38] sm:$0xff] %v3350_v18  ;;  %v3185_v44 = vadd.f32 %v3167_v9, %v2966_v16 }
 0x35b   : > { %v3323_v19 = vadd.f32 %v3305_v63, %v3185_v44 }
 0x35c   : > { %v3312_v13 = vpop.f32.mrf.mxu2 }
 0x35d   : > { %v3339_v20 = vadd.f32 %v5369_v0, %v3323_v19 }
 0x35f   : > { %v3351_v47 = vmax.f32 %v3339_v20, 0.0 }
 0x360   : > { %v3169_v43 = vpop.f32.mrf.mxu1 }
 0x361   : > { %3363 = vst [vmem:[%s5377_s30 + $0x40] sm:$0xff] %v3351_v47  ;;  %v3186_v55 = vadd.f32 %v3169_v43, %v2967_v3 }
 0x363   : > { %v3324_v17 = vadd.f32 %v3307_v1, %v3186_v55 }
 0x365   : > { %v3340_v31 = vadd.f32 %v5369_v0, %v3324_v17 }
 0x367   : > { %v3352_v33 = vmax.f32 %v3340_v31, 0.0 }
 0x368   : > { %v3172_v2 = vpop.f32.mrf.mxu1 }
 0x369   : > { %3364 = vst [vmem:[%s5377_s30 + $0x48] sm:$0xff] %v3352_v33  ;;  %v3187_v46 = vadd.f32 %v3172_v2, %v2968_v54 }
 0x36b   : > { %v3325_v7 = vadd.f32 %v3310_v42, %v3187_v46 }
 0x36d   : > { %v3341_v12 = vadd.f32 %v5369_v0, %v3325_v7 }
 0x36f   : > { %v3353_v30 = vmax.f32 %v3341_v12, 0.0 }
 0x370   : > { %v3174_v59 = vpop.f32.mrf.mxu1 }
 0x371   : > { %3365 = vst [vmem:[%s5377_s30 + $0x50] sm:$0xff] %v3353_v30  ;;  %v3188_v32 = vadd.f32 %v3174_v59, %v2969_v8 }
 0x373   : > { %v3326_v45 = vadd.f32 %v3312_v13, %v3188_v32 }
 0x375   : > { %v3342_v11 = vadd.f32 %v5369_v0, %v3326_v45 }
 0x377   : > { %v3354_v27 = vmax.f32 %v3342_v11, 0.0 }
 0x379   : > { %3366 = vst [vmem:[%s5377_s30 + $0x58] sm:$0xff] %v3354_v27 }
 0x37a PF: > { %s16_s23 = sadd.s32 1, %s4279_s23   ;;  %s5428_s21 = smov %s4275_s22 }
 0x37b   : > { %p13_p5 = scmp.ge.s32.totalorder %s16_s23, 4   ;;  %s5429_s22 = smov %s5431_s24 }
 0x37d   :  { %15 = sbr.rel (!%p13_p5) target bundleno = 2 (0x2), region = 77 }

</bundles_post_ra>
